<compile_context>
chip_gen: v7x
topology: tpu7x:2x2x1
jax: 0.10.0
libtpu: 0.0.40
codegen_flags: <defaults>
</compile_context>

<pallas_src>
import jax
import jax.numpy as jnp
import numpy as np
from jax.experimental import pallas as pl
from jax.experimental.pallas import tpu as pltpu


def _monotone_kernel(x_ref, xt_ref, w3_ref, a_ref, o_ref):
    # x_ref : (TB, d)  f32   batch tile (features on lanes; d is small)
    # xt_ref: (d, n)   f32   X transposed (n on lanes), resident
    # w3_ref: (n, n)   bf16  triu(ones).T, resident
    # a_ref : (1, n)   f32   output weights row, resident
    # o_ref : (TB, 1)  f32
    x = x_ref[...]
    d = x.shape[1]

    # Layers 1+2 (biases folded): h2[b, i] = all_j (x[b, j] >= X[i, j]).
    # d compares of a lane-broadcast column vs a sublane-broadcast row, ANDed.
    # Comparisons stay in f32 (thresholds are discontinuous — no bf16 here).
    ok = x[:, 0:1] >= xt_ref[0:1, :]                       # (TB, n) bool
    for j in range(1, d):
        ok = jnp.logical_and(ok, x[:, j:j + 1] >= xt_ref[j:j + 1, :])
    h2 = ok.astype(jnp.bfloat16)                           # exact 0/1 in bf16

    # Layer 3 (bias folded): cum[b, i] = sum_{k >= i} h2[b, k]; h3 = cum >= 1.
    # Single small MXU matmul with bf16 operands, f32 accumulation (exact).
    cum = jnp.dot(h2, w3_ref[...], preferred_element_type=jnp.float32)
    h3 = (cum >= 1.0).astype(jnp.float32)                  # (TB, n)

    # Output layer: multiply by resident a row and lane-reduce (VPU/XLU, no MXU).
    o_ref[...] = jnp.sum(h3 * a_ref[...], axis=-1, keepdims=True)


def monotone_network_forward(x, params, *, block_b=256):
    """x: (B, d) float32. Returns (B,) float32."""
    xt, w3, a_row = params
    B, d = x.shape
    n = xt.shape[1]

    TB = int(block_b)
    num_tiles = int(pl.cdiv(B, TB))
    B_pad = num_tiles * TB
    if B_pad != B:
        # Pad the batch so every tile is full; padded rows are discarded below.
        x = jnp.pad(x, ((0, B_pad - B), (0, 0)))

    out = pl.pallas_call(
        _monotone_kernel,
        out_shape=jax.ShapeDtypeStruct((B_pad, 1), jnp.float32),
        grid=(num_tiles,),
        in_specs=[
            pl.BlockSpec((TB, d), lambda i: (i, 0)),        # x: tiled over batch
            pl.BlockSpec(xt.shape, lambda i: (0, 0)),       # X^T: resident
            pl.BlockSpec(w3.shape, lambda i: (0, 0)),       # W3: resident
            pl.BlockSpec(a_row.shape, lambda i: (0, 0)),    # a row: resident
        ],
        out_specs=pl.BlockSpec((TB, 1), lambda i: (i, 0)),
        compiler_params=pltpu.CompilerParams(
            dimension_semantics=("parallel",),              # megacore on v7x
        ),
    )(x, xt, w3, a_row)
    return out[:B, 0]


def build_params(X, Y):
    """Structural parameters equivalent to monotone_network.__init__.

    Instead of materializing W1 (d, n*d) / W2 (n*d, n), we keep only:
      Xt    (d, n)  f32  : X transposed (encodes l1 weights + bias, l2 sum)
      W3    (n, n)  bf16 : triu(ones).T for the l3 cumulative count
      a_row (1, n)  f32  : output-layer weights a[0]=Y[0], a[i]=Y[i]-Y[i-1]
    """
    n, d = X.shape
    xt = X.T.astype(jnp.float32)                                        # (d, n)
    w3 = jnp.triu(jnp.ones((n, n), dtype=jnp.float32)).T.astype(jnp.bfloat16)
    a_row = jnp.concatenate([Y[:1], Y[1:] - Y[:-1]]).reshape(1, n).astype(jnp.float32)
    return xt, w3, a_row


def _reference_forward(x, X, Y):
    """Pure-JAX reference matching the PyTorch forward (explicit matmuls)."""
    n, d = X.shape
    hp = jax.lax.Precision.HIGHEST
    W1 = jnp.tile(jnp.eye(d, dtype=jnp.float32), (n, 1))                # (n*d, d)
    h1 = jnp.dot(x, W1.T, precision=hp) + (-X.reshape(-1))
    h1 = (h1 >= 0.0).astype(jnp.float32)
    W2 = jnp.kron(jnp.eye(n, dtype=jnp.float32),
                  jnp.ones((1, d), dtype=jnp.float32))                  # (n, n*d)
    h2 = jnp.dot(h1, W2.T, precision=hp) + jnp.full((n,), -float(d), jnp.float32)
    h2 = (h2 >= 0.0).astype(jnp.float32)
    W3 = jnp.triu(jnp.ones((n, n), dtype=jnp.float32))
    h3 = jnp.dot(h2, W3.T, precision=hp) + jnp.full((n,), -1.0, jnp.float32)
    h3 = (h3 >= 0.0).astype(jnp.float32)
    a = jnp.concatenate([Y[:1], Y[1:] - Y[:-1]])
    return jnp.dot(h3, a, precision=hp)


if __name__ == "__main__":
    key = jax.random.PRNGKey(0)
    k_x, k_X, k_Y = jax.random.split(key, 3)

    n, d, B = 8, 4, 2                     # n data points, d features, batch B

    # Deterministic "training data" defining the monotone network.
    X = jnp.sort(jax.random.uniform(k_X, (n, d), dtype=jnp.float32), axis=0)
    Y = jnp.sort(jax.random.uniform(k_Y, (n,), dtype=jnp.float32))

    # Example batch of query points.
    x = jax.random.uniform(k_x, (B, d), dtype=jnp.float32)

    params = build_params(X, Y)
    out = monotone_network_forward(x, params)
    out = jax.block_until_ready(out)

    ref = _reference_forward(x, X, Y)
    np.testing.assert_allclose(np.asarray(out), np.asarray(ref),
                               rtol=1e-5, atol=1e-5)

    print("KERNEL_OK")
</pallas_src>

<mosaic_0001>
module attributes {stable_mosaic.version = 11 : i64} {
  func.func @_monotone_kernel(%arg0: i32, %arg1: memref<256x4xf32, #tpu.memory_space<vmem>>, %arg2: memref<4x8xf32, #tpu.memory_space<vmem>>, %arg3: memref<8x8xbf16, #tpu.memory_space<vmem>>, %arg4: memref<1x8xf32, #tpu.memory_space<vmem>>, %arg5: memref<256x1xf32, #tpu.memory_space<vmem>>) attributes {dimension_semantics = [#tpu.dimension_semantics<parallel>], iteration_bounds = array<i64: 1>, scalar_prefetch = 0 : i64, scratch_operands = 0 : i64, tpu.core_type = #tpu.core_type<tc>, window_params = [{transform_indices = @transform_0, window_bounds = array<i64: 256, 4>}, {pipeline_mode = #tpu.pipeline_mode<synchronous>, transform_indices = @transform_1, window_bounds = array<i64: 4, 8>}, {pipeline_mode = #tpu.pipeline_mode<synchronous>, transform_indices = @transform_2, window_bounds = array<i64: 8, 8>}, {pipeline_mode = #tpu.pipeline_mode<synchronous>, transform_indices = @transform_3, window_bounds = array<i64: 1, 8>}, {transform_indices = @transform_4, window_bounds = array<i64: 256, 1>}]} {
    %c0 = arith.constant 0 : index
    %c0_0 = arith.constant 0 : index
    %0 = vector.load %arg1[%c0, %c0_0] : memref<256x4xf32, #tpu.memory_space<vmem>>, vector<256x4xf32>
    %1 = vector.extract_strided_slice %0 {offsets = [0, 0], sizes = [256, 1], strides = [1, 1]} : vector<256x4xf32> to vector<256x1xf32>
    %c0_1 = arith.constant 0 : index
    %c0_2 = arith.constant 0 : index
    %2 = vector.load %arg2[%c0_1, %c0_2] : memref<4x8xf32, #tpu.memory_space<vmem>>, vector<1x8xf32>
    %3 = vector.broadcast %1 : vector<256x1xf32> to vector<256x8xf32>
    %4 = vector.broadcast %2 : vector<1x8xf32> to vector<256x8xf32>
    %5 = arith.cmpf oge, %3, %4 : vector<256x8xf32>
    %6 = vector.extract_strided_slice %0 {offsets = [0, 1], sizes = [256, 1], strides = [1, 1]} : vector<256x4xf32> to vector<256x1xf32>
    %c1 = arith.constant 1 : index
    %c0_3 = arith.constant 0 : index
    %7 = vector.load %arg2[%c1, %c0_3] : memref<4x8xf32, #tpu.memory_space<vmem>>, vector<1x8xf32>
    %8 = vector.broadcast %6 : vector<256x1xf32> to vector<256x8xf32>
    %9 = vector.broadcast %7 : vector<1x8xf32> to vector<256x8xf32>
    %10 = arith.cmpf oge, %8, %9 : vector<256x8xf32>
    %11 = arith.andi %5, %10 : vector<256x8xi1>
    %12 = vector.extract_strided_slice %0 {offsets = [0, 2], sizes = [256, 1], strides = [1, 1]} : vector<256x4xf32> to vector<256x1xf32>
    %c2 = arith.constant 2 : index
    %c0_4 = arith.constant 0 : index
    %13 = vector.load %arg2[%c2, %c0_4] : memref<4x8xf32, #tpu.memory_space<vmem>>, vector<1x8xf32>
    %14 = vector.broadcast %12 : vector<256x1xf32> to vector<256x8xf32>
    %15 = vector.broadcast %13 : vector<1x8xf32> to vector<256x8xf32>
    %16 = arith.cmpf oge, %14, %15 : vector<256x8xf32>
    %17 = arith.andi %11, %16 : vector<256x8xi1>
    %18 = vector.extract_strided_slice %0 {offsets = [0, 3], sizes = [256, 1], strides = [1, 1]} : vector<256x4xf32> to vector<256x1xf32>
    %c3 = arith.constant 3 : index
    %c0_5 = arith.constant 0 : index
    %19 = vector.load %arg2[%c3, %c0_5] : memref<4x8xf32, #tpu.memory_space<vmem>>, vector<1x8xf32>
    %20 = vector.broadcast %18 : vector<256x1xf32> to vector<256x8xf32>
    %21 = vector.broadcast %19 : vector<1x8xf32> to vector<256x8xf32>
    %22 = arith.cmpf oge, %20, %21 : vector<256x8xf32>
    %23 = arith.andi %17, %22 : vector<256x8xi1>
    %24 = arith.extui %23 : vector<256x8xi1> to vector<256x8xi32>
    %25 = arith.sitofp %24 : vector<256x8xi32> to vector<256x8xf32>
    %26 = arith.truncf %25 : vector<256x8xf32> to vector<256x8xbf16>
    %c0_6 = arith.constant 0 : index
    %c0_7 = arith.constant 0 : index
    %27 = vector.load %arg3[%c0_6, %c0_7] : memref<8x8xbf16, #tpu.memory_space<vmem>>, vector<8x8xbf16>
    %cst = arith.constant dense<0.000000e+00> : vector<256x8xf32>
    %28 = tpu.matmul %26, %27, %cst {dimension_numbers = #tpu.dot_dimension_numbers<[1], [0], [0], [1], [0, 0, 1, 1], [], []>} : vector<256x8xbf16>, vector<8x8xbf16>, vector<256x8xf32> -> vector<256x8xf32>
    %cst_8 = arith.constant 1.000000e+00 : f32
    %29 = vector.broadcast %cst_8 : f32 to vector<256x8xf32>
    %30 = arith.cmpf oge, %28, %29 : vector<256x8xf32>
    %31 = arith.extui %30 : vector<256x8xi1> to vector<256x8xi32>
    %32 = arith.sitofp %31 : vector<256x8xi32> to vector<256x8xf32>
    %c0_9 = arith.constant 0 : index
    %c0_10 = arith.constant 0 : index
    %33 = vector.load %arg4[%c0_9, %c0_10] : memref<1x8xf32, #tpu.memory_space<vmem>>, vector<1x8xf32>
    %34 = vector.broadcast %33 : vector<1x8xf32> to vector<256x8xf32>
    %35 = arith.mulf %32, %34 : vector<256x8xf32>
    %cst_11 = arith.constant dense<0.000000e+00> : vector<256xf32>
    %36 = vector.multi_reduction <add>, %35, %cst_11 [1] : vector<256x8xf32> to vector<256xf32>
    %37 = vector.shape_cast %36 : vector<256xf32> to vector<256x1xf32>
    %c0_12 = arith.constant 0 : index
    %c0_13 = arith.constant 0 : index
    %38 = vector.load %arg5[%c0_12, %c0_13] : memref<256x1xf32, #tpu.memory_space<vmem>>, vector<256x1xf32>
    tpu.vector_store %arg5[%c0_12, %c0_13], %37 {strides = array<i32>} : memref<256x1xf32, #tpu.memory_space<vmem>>, vector<256x1xf32>,
    return
  }
  func.func @transform_0(%arg0: i32) -> (i32, i32) {
    %c0_i32 = arith.constant 0 : i32
    %c0_i32_0 = arith.constant 0 : i32
    return %arg0, %c0_i32 : i32, i32
  }
  func.func @transform_1(%arg0: i32) -> (i32, i32) {
    %c0_i32 = arith.constant 0 : i32
    %c0_i32_0 = arith.constant 0 : i32
    %c0_i32_1 = arith.constant 0 : i32
    return %c0_i32, %c0_i32_0 : i32, i32
  }
  func.func @transform_2(%arg0: i32) -> (i32, i32) {
    %c0_i32 = arith.constant 0 : i32
    %c0_i32_0 = arith.constant 0 : i32
    %c0_i32_1 = arith.constant 0 : i32
    return %c0_i32, %c0_i32_0 : i32, i32
  }
  func.func @transform_3(%arg0: i32) -> (i32, i32) {
    %c0_i32 = arith.constant 0 : i32
    %c0_i32_0 = arith.constant 0 : i32
    %c0_i32_1 = arith.constant 0 : i32
    return %c0_i32, %c0_i32_0 : i32, i32
  }
  func.func @transform_4(%arg0: i32) -> (i32, i32) {
    %c0_i32 = arith.constant 0 : i32
    %c0_i32_0 = arith.constant 0 : i32
    return %arg0, %c0_i32 : i32, i32
  }
}

</mosaic_0001>

<bundles_post_ra>
// kernel: tpu_custom_call.1
= control target key start
LH: loop header
LB: loop body
LE: loop exit
PB: predicated region body
PF: predicated region fallthrough
CT: control target
= control target key end

     0   :  { %v1563_v0 = vmov 0   ;;  %v2891_v33 = vmov 1   ;;  %v2890_v34 = vmov 2   ;;  %v2892_v35 = vmov 3   ;;  %s2885_s0 = inlined_call_operand.vmem [shape: f32[256,4], index: 0, kind: input, shape index: {}]   ;;  %s2886_s2 = inlined_call_operand.vmem [shape: bf16[8,8], index: 2, kind: input, shape index: {}]   ;;  %s2887_s1 = inlined_call_operand.vmem [shape: f32[4,8], index: 1, kind: input, shape index: {}]   ;;  %s2888_s3 = inlined_call_operand.vmem [shape: f32[1,8], index: 3, kind: input, shape index: {}]   ;;  %s2889_s4 = inlined_call_operand.vmem [shape: f32[256,1], index: 4, kind: output, shape index: {}]  }
   0x1   :  { %1547 = vset.pattern.permute.xlu1 %v1563_v0  ;;  %1546 = vset.pattern.permute.xlu0 %v1563_v0  ;;  %v1596_v1 = vld [vmem:[%s2885_s0 + $0x10] sm:$0xff]  ;;  %v1601_v2 = vld [vmem:[%s2885_s0] sm:$0xff]  ;;  %v1608_v3 = vld [vmem:[%s2885_s0 + $0x18] sm:$0xff]  ;;  %vm968_vm0 = vcmask 1043456  }
   0x2   :  { %63 = vperm.xlu1 %1547, %v1596_v1   ;;  %53 = vperm.xlu0 %1546, %v1601_v2   ;;  %v1613_v4 = vld [vmem:[%s2885_s0 + $0x8] sm:$0xff]  ;;  %v1625_v6 = vld [vmem:[%s2885_s0 + $0x20] sm:$0xff]  ;;  %v1632_v7 = vld [vmem:[%s2885_s0 + $0x38] sm:$0xff] }
   0x3   :  { %v1620_v5 = vld [vmem:[%s2885_s0 + $0x28] sm:$0xff]  ;;  %v1637_v8 = vld [vmem:[%s2885_s0 + $0x30] sm:$0xff]  ;;  %v1649_v10 = vld [vmem:[%s2885_s0 + $0x40] sm:$0xff] }
   0x4   :  { %v1644_v9 = vld [vmem:[%s2885_s0 + $0x48] sm:$0xff]  ;;  %v1656_v11 = vld [vmem:[%s2885_s0 + $0x58] sm:$0xff]  ;;  %v1661_v12 = vld [vmem:[%s2885_s0 + $0x50] sm:$0xff] }
   0x5   :  { %v1668_v13 = vld [vmem:[%s2885_s0 + $0x68] sm:$0xff]  ;;  %v1673_v14 = vld [vmem:[%s2885_s0 + $0x60] sm:$0xff]  ;;  %v1680_v15 = vld [vmem:[%s2885_s0 + $0x78] sm:$0xff] }
   0x6   :  { %68 = vperm.xlu1 %1547, %v1608_v3   ;;  %58 = vperm.xlu0 %1546, %v1613_v4   ;;  %v1685_v16 = vld [vmem:[%s2885_s0 + $0x70] sm:$0xff]  ;;  %v1692_v17 = vld [vmem:[%s2885_s0 + $0x88] sm:$0xff]  ;;  %v1697_v18 = vld [vmem:[%s2885_s0 + $0x80] sm:$0xff] }
   0x7   :  { %v1704_v19 = vld [vmem:[%s2885_s0 + $0x98] sm:$0xff]  ;;  %v1709_v20 = vld [vmem:[%s2885_s0 + $0x90] sm:$0xff]  ;;  %v1716_v21 = vld [vmem:[%s2885_s0 + $0xa8] sm:$0xff] }
   0x8   :  { %v1721_v22 = vld [vmem:[%s2885_s0 + $0xa0] sm:$0xff]  ;;  %v1728_v23 = vld [vmem:[%s2885_s0 + $0xb8] sm:$0xff]  ;;  %v1733_v24 = vld [vmem:[%s2885_s0 + $0xb0] sm:$0xff] }
   0x9   :  { %v1740_v25 = vld [vmem:[%s2885_s0 + $0xc8] sm:$0xff]  ;;  %v1745_v26 = vld [vmem:[%s2885_s0 + $0xc0] sm:$0xff]  ;;  %v1752_v27 = vld [vmem:[%s2885_s0 + $0xd8] sm:$0xff] }
   0xa   :  { %78 = vperm.xlu1 %1547, %v1620_v5   ;;  %73 = vperm.xlu0 %1546, %v1625_v6   ;;  %v1757_v28 = vld [vmem:[%s2885_s0 + $0xd0] sm:$0xff]  ;;  %v1764_v29 = vld [vmem:[%s2885_s0 + $0xe8] sm:$0xff]  ;;  %v1769_v30 = vld [vmem:[%s2885_s0 + $0xe0] sm:$0xff] }
   0xb   :  { %v1776_v31 = vld [vmem:[%s2885_s0 + $0xf8] sm:$0xff]  ;;  %v1781_v32 = vld [vmem:[%s2885_s0 + $0xf0] sm:$0xff] }
   0xe   :  { %88 = vperm.xlu1 %1547, %v1632_v7   ;;  %83 = vperm.xlu0 %1546, %v1637_v8  }
  0x12   :  { %98 = vperm.xlu1 %1547, %v1644_v9   ;;  %93 = vperm.xlu0 %1546, %v1649_v10  }
  0x16   :  { %108 = vperm.xlu1 %1547, %v1656_v11   ;;  %103 = vperm.xlu0 %1546, %v1661_v12  }
  0x1a   :  { %118 = vperm.xlu1 %1547, %v1668_v13   ;;  %113 = vperm.xlu0 %1546, %v1673_v14  }
  0x1e   :  { %128 = vperm.xlu1 %1547, %v1680_v15   ;;  %123 = vperm.xlu0 %1546, %v1685_v16  }
  0x22   :  { %138 = vperm.xlu1 %1547, %v1692_v17   ;;  %133 = vperm.xlu0 %1546, %v1697_v18  }
  0x26   :  { %148 = vperm.xlu1 %1547, %v1704_v19   ;;  %143 = vperm.xlu0 %1546, %v1709_v20  }
  0x2a   :  { %158 = vperm.xlu1 %1547, %v1716_v21   ;;  %153 = vperm.xlu0 %1546, %v1721_v22  }
  0x2e   :  { %168 = vperm.xlu1 %1547, %v1728_v23   ;;  %163 = vperm.xlu0 %1546, %v1733_v24  }
  0x32   :  { %178 = vperm.xlu1 %1547, %v1740_v25   ;;  %173 = vperm.xlu0 %1546, %v1745_v26  }
  0x36   :  { %188 = vperm.xlu1 %1547, %v1752_v27   ;;  %183 = vperm.xlu0 %1546, %v1757_v28  }
  0x3a   :  { %198 = vperm.xlu1 %1547, %v1764_v29   ;;  %193 = vperm.xlu0 %1546, %v1769_v30  }
  0x3e   :  { %208 = vperm.xlu1 %1547, %v1776_v31   ;;  %203 = vperm.xlu0 %1546, %v1781_v32  }
  0x42   :  { %1549 = vset.pattern.permute.xlu1 %v2891_v33  ;;  %1548 = vset.pattern.permute.xlu0 %v2891_v33 }
  0x43   :  { %253 = vperm.xlu1 %1549, %v1613_v4   ;;  %249 = vperm.xlu0 %1548, %v1601_v2  }
  0x47   :  { %257 = vperm.xlu1 %1549, %v1596_v1   ;;  %261 = vperm.xlu0 %1548, %v1608_v3  }
  0x4b   :  { %265 = vperm.xlu1 %1549, %v1625_v6   ;;  %269 = vperm.xlu0 %1548, %v1620_v5  }
  0x4f   :  { %273 = vperm.xlu1 %1549, %v1637_v8   ;;  %277 = vperm.xlu0 %1548, %v1632_v7  }
  0x53   :  { %281 = vperm.xlu1 %1549, %v1649_v10   ;;  %285 = vperm.xlu0 %1548, %v1644_v9  }
  0x57   :  { %289 = vperm.xlu1 %1549, %v1661_v12   ;;  %293 = vperm.xlu0 %1548, %v1656_v11  }
  0x5b   :  { %297 = vperm.xlu1 %1549, %v1673_v14   ;;  %301 = vperm.xlu0 %1548, %v1668_v13  }
  0x5f   :  { %305 = vperm.xlu1 %1549, %v1685_v16   ;;  %309 = vperm.xlu0 %1548, %v1680_v15  }
  0x63   :  { %313 = vperm.xlu1 %1549, %v1697_v18   ;;  %317 = vperm.xlu0 %1548, %v1692_v17  }
  0x67   :  { %321 = vperm.xlu1 %1549, %v1709_v20   ;;  %325 = vperm.xlu0 %1548, %v1704_v19  }
  0x6b   :  { %1550 = vset.pattern.permute.xlu1 %v2890_v34  ;;  %333 = vperm.xlu0 %1548, %v1716_v21  }
  0x6c   :  { %446 = vperm.xlu1 %1550, %v1601_v2  }
  0x6f   :  { %345 = vperm.xlu0 %1548, %v1745_v26  }
  0x70   :  { %510 = vperm.xlu1 %1550, %v1697_v18  }
  0x73   :  { %357 = vperm.xlu0 %1548, %v1752_v27  }
  0x74   :  { %514 = vperm.xlu1 %1550, %v1692_v17  }
  0x77   :  { %365 = vperm.xlu0 %1548, %v1764_v29  }
  0x78   :  { %458 = vperm.xlu1 %1550, %v1608_v3  }
  0x7b   :  { %1559 = vset.pattern.permute.xlu0 %v2890_v34 }
  0x7c   :  { %522 = vperm.xlu1 %1550, %v1704_v19   ;;  %450 = vperm.xlu0 %1559, %v1613_v4  }
  0x80   :  { %1551 = vset.pattern.permute.xlu1 %v2892_v35  ;;  %454 = vperm.xlu0 %1559, %v1596_v1  }
  0x81   :  { %v1821_v36 = vpop.permute.xlu1 %63  ;;  %647 = vperm.xlu1 %1551, %v1613_v4   ;;  %v1824_v37 = vpop.permute.xlu0 %53 }
  0x84   :  { %518 = vperm.xlu0 %1559, %v1709_v20  }
  0x85   :  { %v1827_v38 = vpop.permute.xlu1 %68  ;;  %707 = vperm.xlu1 %1551, %v1697_v18   ;;  %v1830_v39 = vpop.permute.xlu0 %58 }
  0x88   :  { %462 = vperm.xlu0 %1559, %v1625_v6  }
  0x89   :  { %v1833_v40 = vpop.permute.xlu1 %78  ;;  %651 = vperm.xlu1 %1551, %v1596_v1   ;;  %v1836_v41 = vpop.permute.xlu0 %73 }
  0x8c   :  { %530 = vperm.xlu0 %1559, %v1716_v21  }
  0x8d   :  { %v1839_v42 = vpop.permute.xlu1 %88  ;;  %715 = vperm.xlu1 %1551, %v1709_v20   ;;  %v1842_v43 = vpop.permute.xlu0 %83 }
  0x90   :  { %474 = vperm.xlu0 %1559, %v1632_v7  }
  0x91   :  { %v1845_v44 = vpop.permute.xlu1 %98  ;;  %1552 = vset.pattern.permute.xlu1 %v2891_v33  ;;  %v1848_v45 = vpop.permute.xlu0 %93 }
  0x92   :  { %2893 = vst [vmem:[#allocation2_spill] sm:$0xff] %v1845_v44  ;;  %2894 = vst [vmem:[#allocation3_spill] sm:$0xff] %v1848_v45  ;;  %329 = vperm.xlu1 %1552, %v1721_v22  }
  0x94   :  { %538 = vperm.xlu0 %1559, %v1728_v23  }
  0x95   :  { %v1852_v46 = vpop.permute.xlu1 %108  ;;  %v1854_v47 = vpop.permute.xlu0 %103 }
  0x96   :  { %2895 = vst [vmem:[#allocation4_spill] sm:$0xff] %v1852_v46  ;;  %2896 = vst [vmem:[#allocation5_spill] sm:$0xff] %v1854_v47  ;;  %337 = vperm.xlu1 %1552, %v1733_v24  }
  0x98   :  { %482 = vperm.xlu0 %1559, %v1644_v9  }
  0x99   :  { %v1858_v48 = vpop.permute.xlu1 %118  ;;  %v1860_v49 = vpop.permute.xlu0 %113 }
  0x9a   :  { %2897 = vst [vmem:[#allocation6_spill] sm:$0xff] %v1858_v48  ;;  %341 = vperm.xlu1 %1552, %v1728_v23   ;;  %v2914_v48 = vmov 1  }
  0x9c   :  { %486 = vperm.xlu0 %1559, %v1661_v12  }
  0x9d   :  { %v1864_v50 = vpop.permute.xlu1 %128  ;;  %v1866_v51 = vpop.permute.xlu0 %123 }
  0x9e   :  { %2898 = vst [vmem:[#allocation7_spill] sm:$0xff] %v1866_v51  ;;  %1553 = vset.pattern.permute.xlu1 %v2890_v34 }
  0x9f   :  { %466 = vperm.xlu1 %1553, %v1620_v5  }
  0xa0   :  { %550 = vperm.xlu0 %1559, %v1757_v28  }
  0xa1   :  { %v1871_v52 = vpop.permute.xlu1 %138  ;;  %v1873_v53 = vpop.permute.xlu0 %133 }
  0xa3   :  { %526 = vperm.xlu1 %1553, %v1721_v22  }
  0xa4   :  { %494 = vperm.xlu0 %1559, %v1673_v14  }
  0xa5   :  { %v1877_v54 = vpop.permute.xlu1 %148  ;;  %v1879_v55 = vpop.permute.xlu0 %143 }
  0xa7   :  { %470 = vperm.xlu1 %1553, %v1637_v8  }
  0xa8   :  { %562 = vperm.xlu0 %1559, %v1764_v29  }
  0xa9   :  { %v1883_v56 = vpop.permute.xlu1 %158  ;;  %v1885_v57 = vpop.permute.xlu0 %153 }
  0xab   :  { %534 = vperm.xlu1 %1553, %v1733_v24  }
  0xac   :  { %506 = vperm.xlu0 %1559, %v1680_v15  }
  0xad   :  { %v1889_v58 = vpop.permute.xlu1 %168  ;;  %v1891_v59 = vpop.permute.xlu0 %163 }
  0xaf   :  { %1554 = vset.pattern.permute.xlu1 %v2892_v35 }
  0xb0   :  { %659 = vperm.xlu1 %1554, %v1625_v6   ;;  %570 = vperm.xlu0 %1559, %v1776_v31  }
  0xb1   :  { %v1896_v60 = vpop.permute.xlu1 %178  ;;  %v1898_v61 = vpop.permute.xlu0 %173 }
  0xb2   :  { %2899 = vst [vmem:[#allocation8_spill] sm:$0xff] %v1896_v60  ;;  %2900 = vst [vmem:[#allocation9_spill] sm:$0xff] %v1898_v61  ;;  %v2917_v60 = vmov 2  }
  0xb4   :  { %723 = vperm.xlu1 %1554, %v1721_v22   ;;  %1561 = vset.pattern.permute.xlu0 %v2892_v35 }
  0xb5   :  { %v1902_v62 = vpop.permute.xlu1 %188  ;;  %643 = vperm.xlu0 %1561, %v1601_v2   ;;  %v1905_v63 = vpop.permute.xlu0 %183  ;;  %v918_v2 = vld [vmem:[%s2886_s2] sm:$0xf] }
  0xb6   :  { %2901 = vst [vmem:[#allocation10_spill] sm:$0xff] %v1902_v62  ;;  %2902 = vst [vmem:[#allocation11_spill] sm:$0xff] %v1905_v63  ;;  %1539 = vmatprep.subr.msk.bf16.mxu0 %vm968_vm0, %v918_v2  ;;  %v970_v18 = vsel %vm968_vm0, %v918_v2, 0  ;;  %1540 = vmatprep.subr.msk.bf16.mxu1 %vm968_vm0, %v918_v2 }
  0xb7   :  { %1504 = vmatpush3.bf16.msra.mxu0 %v970_v18  ;;  %1538 = vmatpush3.bf16.msra.mxu1 %v970_v18 }
  0xb8   :  { %727 = vperm.xlu1 %1554, %v1716_v21  }
  0xb9   :  { %v1908_v0 = vpop.permute.xlu1 %198  ;;  %711 = vperm.xlu0 %1561, %v1692_v17   ;;  %v1911_v1 = vpop.permute.xlu0 %193 }
  0xba   :  { %2903 = vst [vmem:[#allocation12_spill] sm:$0xff] %v1911_v1 }
  0xbc   :  { %671 = vperm.xlu1 %1554, %v1632_v7  }
  0xbd   :  { %v1914_v4 = vpop.permute.xlu1 %208  ;;  %655 = vperm.xlu0 %1561, %v1608_v3   ;;  %v1917_v6 = vpop.permute.xlu0 %203 }
  0xbe   :  { %2904 = vst [vmem:[#allocation13_spill] sm:$0xff] %v1914_v4  ;;  %2905 = vst [vmem:[#allocation14_spill] sm:$0xff] %v1917_v6  ;;  %v2927_v4 = vmov 0 }
  0xc0   :  { %735 = vperm.xlu1 %1554, %v1728_v23  }
  0xc1   :  { %719 = vperm.xlu0 %1561, %v1704_v19  }
  0xc2   :  { %v1924_v7 = vpop.permute.xlu1 %253  ;;  %v1926_v17 = vpop.permute.xlu0 %249 }
  0xc4   :  { %1555 = vset.pattern.permute.xlu1 %v2891_v33 }
  0xc5   :  { %349 = vperm.xlu1 %1555, %v1740_v25   ;;  %663 = vperm.xlu0 %1561, %v1620_v5  }
  0xc6   :  { %v1931_v3 = vpop.permute.xlu1 %257  ;;  %v1933_v20 = vpop.permute.xlu0 %261 }
  0xc9   :  { %353 = vperm.xlu1 %1555, %v1757_v28   ;;  %667 = vperm.xlu0 %1561, %v1637_v8  }
  0xca   :  { %v1937_v19 = vpop.permute.xlu1 %265  ;;  %v1939_v21 = vpop.permute.xlu0 %269 }
  0xcd   :  { %1556 = vset.pattern.permute.xlu1 %v2890_v34  ;;  %731 = vperm.xlu0 %1561, %v1733_v24  }
  0xce   :  { %v1943_v22 = vpop.permute.xlu1 %273  ;;  %478 = vperm.xlu1 %1556, %v1649_v10   ;;  %v1946_v5 = vpop.permute.xlu0 %277 }
  0xd1   :  { %675 = vperm.xlu0 %1561, %v1649_v10  }
  0xd2   :  { %v1949_v23 = vpop.permute.xlu1 %281  ;;  %542 = vperm.xlu1 %1556, %v1745_v26   ;;  %v1952_v8 = vpop.permute.xlu0 %285 }
  0xd3   :  { %2906 = vst [vmem:[#allocation15_spill] sm:$0xff] %v1949_v23  ;;  %2907 = vst [vmem:[#allocation16_spill] sm:$0xff] %v1952_v8 }
  0xd5   :  { %743 = vperm.xlu0 %1561, %v1740_v25  }
  0xd6   :  { %v1955_v2 = vpop.permute.xlu1 %289  ;;  %546 = vperm.xlu1 %1556, %v1740_v25   ;;  %v1958_v24 = vpop.permute.xlu0 %293 }
  0xd7   :  { %2908 = vst [vmem:[#allocation17_spill] sm:$0xff] %v1955_v2  ;;  %2909 = vst [vmem:[#allocation18_spill] sm:$0xff] %v1958_v24 }
  0xd9   :  { %687 = vperm.xlu0 %1561, %v1656_v11  }
  0xda   :  { %v1961_v18 = vpop.permute.xlu1 %297  ;;  %490 = vperm.xlu1 %1556, %v1656_v11   ;;  %v1964_v10 = vpop.permute.xlu0 %301 }
  0xdb   :  { %2910 = vst [vmem:[#allocation19_spill] sm:$0xff] %v1964_v10 }
  0xdd   :  { %751 = vperm.xlu0 %1561, %v1752_v27  }
  0xde   :  { %v1967_v34 = vpop.permute.xlu1 %305  ;;  %554 = vperm.xlu1 %1556, %v1752_v27   ;;  %v1970_v33 = vpop.permute.xlu0 %309 }
  0xdf   :  { %2911 = vst [vmem:[#allocation20_spill] sm:$0xff] %v1967_v34 }
  0xe1   :  { %695 = vperm.xlu0 %1561, %v1668_v13  }
  0xe2   :  { %v1973_v25 = vpop.permute.xlu1 %313  ;;  %1557 = vset.pattern.permute.xlu1 %v2892_v35  ;;  %v1976_v6 = vpop.permute.xlu0 %317 }
  0xe3   :  { %679 = vperm.xlu1 %1557, %v1644_v9  }
  0xe5   :  { %699 = vperm.xlu0 %1561, %v1685_v16  }
  0xe6   :  { %v1980_v11 = vpop.permute.xlu1 %321  ;;  %v1982_v1 = vpop.permute.xlu0 %325 }
  0xe7   :  { %739 = vperm.xlu1 %1557, %v1745_v26   ;;  %v2010_v26 = vld [vmem:[%s2887_s1 + $0x1] ss:$0 sm:$0xff] }
  0xe8   :  { %vm392_vm4 = vcmp.ge.f32.partialorder %v1961_v18, %v2010_v26  ;;  %vm380_vm8 = vcmp.ge.f32.partialorder %v1926_v17, %v2010_v26  ;;  %vm381_vm11 = vcmp.ge.f32.partialorder %v1924_v7, %v2010_v26  ;;  %vm395_vm13 = vcmp.ge.f32.partialorder %v1970_v33, %v2010_v26 }
  0xe9   :  { %763 = vperm.xlu0 %1561, %v1781_v32   ;;  %vm398_vm0 = vcmp.ge.f32.partialorder %v1980_v11, %v2010_v26  ;;  %v2940_v17 = vmov 0 }
  0xea   :  { %v1986_v27 = vpop.permute.xlu0 %333 }
  0xeb   :  { %683 = vperm.xlu1 %1557, %v1661_v12   ;;  %v1989_v51 = vpop.permute.xlu1 %446  ;;  %v2005_v12 = vld [vmem:[%s2887_s1] ss:$0 sm:$0xff] }
  0xec   :  { %vm244_vm1 = vcmp.ge.f32.partialorder %v1908_v0, %v2005_v12  ;;  %vm227_vm5 = vcmp.ge.f32.partialorder %v1860_v49, %v2005_v12  ;;  %vm215_vm10 = vcmp.ge.f32.partialorder %v1824_v37, %v2005_v12  ;;  %vm216_vm15 = vcmp.ge.f32.partialorder %v1830_v39, %v2005_v12 }
  0xed   :  { %vm424_vm6 = vmand %vm227_vm5, %vm392_vm4  ;;  %v2923_v37 = vmov 0  ;;  %vm230_vm5 = vcmp.ge.f32.partialorder %v1864_v50, %v2005_v12 }
  0xee   :  { %v1991_v35 = vpop.permute.xlu0 %345  ;;  %vm2096_vm12 = vmand %vm215_vm10, %vm380_vm8  ;;  %vm218_vm8 = vcmp.ge.f32.partialorder %v1827_v38, %v2005_v12  ;;  %vm397_vm10 = vcmp.ge.f32.partialorder %v1976_v6, %v2010_v26  ;;  %v2934_v38 = vmov 0 }
  0xef   :  { %2912 = vst [vmem:[#allocation21_spill] sm:$0xff] %v1991_v35  ;;  %747 = vperm.xlu1 %1557, %v1757_v28   ;;  %v1994_v9 = vpop.permute.xlu1 %510 }
  0xf2   :  { %v1996_v34 = vpop.permute.xlu0 %357 }
  0xf3   :  { %2913 = vst [vmem:[#allocation22_spill] sm:$0xff] %v1996_v34  ;;  %1558 = vset.pattern.permute.xlu1 %v2914_v48  ;;  %v1999_v10 = vpop.permute.xlu1 %514 }
  0xf4   :  { %361 = vperm.xlu1 %1558, %v1769_v30  }
  0xf6   :  { %v366_v28 = vpop.permute.xlu0 %365 }
  0xf7   :  { %vm409_vm2 = vcmp.ge.f32.partialorder %v366_v28, %v2010_v26  ;;  %v2015_v48 = vpop.permute.xlu1 %458 }
  0xf8   :  { %vm2017_vm3 = vmand %vm244_vm1, %vm409_vm2  ;;  %369 = vperm.xlu1 %1558, %v1781_v32   ;;  %vm383_vm1 = vcmp.ge.f32.partialorder %v1933_v20, %v2010_v26  ;;  %vm396_vm2 = vcmp.ge.f32.partialorder %v1973_v25, %v2010_v26  ;;  %v1567_v25 = vmov 0.0  }
  0xfb   :  { %v2022_v63 = vpop.permute.xlu1 %522  ;;  %v2024_v62 = vpop.permute.xlu0 %450 }
  0xfc   :  { %373 = vperm.xlu1 %1558, %v1776_v31  }
  0xff   :  { %v2027_v34 = vpop.permute.xlu0 %454 }
 0x100   :  { %1560 = vset.pattern.permute.xlu1 %v2917_v60  ;;  %v2030_v0 = vpop.permute.xlu1 %647 }
 0x101   :  { %498 = vperm.xlu1 %1560, %v1668_v13   ;;  %v2918_v13 = vmov 3  }
 0x103   :  { %v2033_v28 = vpop.permute.xlu0 %518 }
 0x104   :  { %v2035_v61 = vpop.permute.xlu1 %707 }
 0x105   :  { %558 = vperm.xlu1 %1560, %v1769_v30  }
 0x107   :  { %v2038_v46 = vpop.permute.xlu0 %462 }
 0x108   :  { %v2040_v47 = vpop.permute.xlu1 %651 }
 0x109   :  { %502 = vperm.xlu1 %1560, %v1685_v16  }
 0x10b   :  { %v2043_v35 = vpop.permute.xlu0 %530 }
 0x10c   :  { %v2045_v24 = vpop.permute.xlu1 %715 }
 0x10d   :  { %566 = vperm.xlu1 %1560, %v1781_v32  }
 0x10f   :  { %v2048_v60 = vpop.permute.xlu0 %474 }
 0x111   :  { %1562 = vset.pattern.permute.xlu1 %v2918_v13  ;;  %v2051_v45 = vpop.permute.xlu1 %329 }
 0x112   :  { %691 = vperm.xlu1 %1562, %v1673_v14  }
 0x113   :  { %v2054_v2 = vpop.permute.xlu0 %538 }
 0x115   :  { %v2056_v44 = vpop.permute.xlu1 %337 }
 0x116   :  { %755 = vperm.xlu1 %1562, %v1769_v30   ;;  %v2919_v30 = vmov 0 }
 0x117   :  { %v2059_v16 = vpop.permute.xlu0 %482 }
 0x119   :  { %v2061_v23 = vpop.permute.xlu1 %341 }
 0x11a   :  { %759 = vperm.xlu1 %1562, %v1764_v29   ;;  %v2081_v29 = vld [vmem:[%s2887_s1 + $0x2] ss:$0 sm:$0xff] }
 0x11b   :  { %v2064_v32 = vpop.permute.xlu0 %486 }
 0x11e   :  { %703 = vperm.xlu1 %1562, %v1680_v15   ;;  %v2067_v13 = vpop.permute.xlu1 %466 }
 0x11f   :  { %v2069_v8 = vpop.permute.xlu0 %550 }
 0x122   :  { %767 = vperm.xlu1 %1562, %v1776_v31   ;;  %v2074_v14 = vpop.permute.xlu1 %526 }
 0x123   :  { %v495_v15 = vpop.permute.xlu0 %494 }
 0x124   :  { %vm589_vm7 = vcmp.ge.f32.partialorder %v495_v15, %v2081_v29 }
 0x125   :  { %vm2086_vm9 = vmand %vm424_vm6, %vm589_vm7  ;;  %vm217_vm7 = vcmp.ge.f32.partialorder %v1821_v36, %v2005_v12 }
 0x126   :  { %v2920_v30 = vsel %vm2086_vm9, 4294967295, %v2919_v30  ;;  %v2090_v31 = vpop.permute.xlu1 %470  ;;  %vm2119_vm6 = vmand %vm216_vm15, %vm381_vm11 }
 0x127   :  { %v563_v49 = vpop.permute.xlu0 %562  ;;  %vm2133_vm11 = vmand %vm218_vm8, %vm383_vm1  ;;  %vm232_vm1 = vcmp.ge.f32.partialorder %v1871_v52, %v2005_v12  ;;  %v2172_v52 = vld [vmem:[%s2887_s1 + $0x3] ss:$0 sm:$0xff] }
 0x128   :  { %vm606_vm14 = vcmp.ge.f32.partialorder %v563_v49, %v2081_v29  ;;  %v2928_v4 = vsel %vm2133_vm11, 4294967295, %v2927_v4  ;;  %vm578_vm11 = vcmp.ge.f32.partialorder %v2024_v62, %v2081_v29  ;;  %v2979_v49 = vmov 0 }
 0x129   :  { %vm2113_vm4 = vmand %vm2017_vm3, %vm606_vm14  ;;  %vm231_vm3 = vcmp.ge.f32.partialorder %v1873_v53, %v2005_v12 }
 0x12a   :  { %v2924_v37 = vsel %vm2113_vm4, 4294967295, %v2923_v37  ;;  %v2123_v39 = vpop.permute.xlu1 %534  ;;  %vm427_vm14 = vmand %vm230_vm5, %vm395_vm13  ;;  %vm2931_vm4 = vcmp.ge.f32.partialorder %v1931_v3, %v2010_v26  ;;  %vm384_vm5 = vcmp.ge.f32.partialorder %v1937_v19, %v2010_v26  ;;  %v2945_v3 = vmov 0  ;;  %v3007_v19 = vld [vmem:[#allocation16_spill] sm:$0xff] }
 0x12b   :  { %v507_v50 = vpop.permute.xlu0 %506  ;;  %vm2137_vm15 = vmand %vm231_vm3, %vm396_vm2  ;;  %vm399_vm2 = vcmp.ge.f32.partialorder %v1982_v1, %v2010_v26  ;;  %vm593_vm3 = vcmp.ge.f32.partialorder %v1994_v9, %v2081_v29  ;;  %v3010_v9 = vld [vmem:[#allocation17_spill] sm:$0xff] }
 0x12c   :  { %vm2146_vm9 = vmand %vm217_vm7, %vm2931_vm4  ;;  %vm592_vm13 = vcmp.ge.f32.partialorder %v507_v50, %v2081_v29  ;;  %vm233_vm4 = vcmp.ge.f32.partialorder %v1879_v55, %v2005_v12  ;;  %v2938_v55 = vmov 0 }
 0x12d   :  { %vm2157_vm8 = vmand %vm427_vm14, %vm592_vm13  ;;  %vm234_vm14 = vcmp.ge.f32.partialorder %v1877_v54, %v2005_v12  ;;  %vm401_vm13 = vcmp.ge.f32.partialorder %v1986_v27, %v2010_v26 }
 0x12e   :  { %v2935_v38 = vsel %vm2157_vm8, 4294967295, %v2934_v38  ;;  %vm2163_vm7 = vmand %vm232_vm1, %vm397_vm10  ;;  %vm236_vm10 = vcmp.ge.f32.partialorder %v1883_v56, %v2005_v12 }
 0x12f   :  { %vm2180_vm1 = vmand %vm233_vm4, %vm398_vm0  ;;  %v2184_v1 = vpop.permute.xlu1 %659  ;;  %v2186_v6 = vpop.permute.xlu0 %570  ;;  %vm2942_vm0 = vcmp.ge.f32.partialorder %v1989_v51, %v2081_v29  ;;  %v2947_v51 = vmov 0 }
 0x130   :  { %v2939_v55 = vsel %vm2180_vm1, 4294967295, %v2938_v55  ;;  %vm2190_vm8 = vmand %vm234_vm14, %vm399_vm2  ;;  %vm775_vm14 = vcmp.ge.f32.partialorder %v2030_v0, %v2172_v52 }
 0x131   :  { %v2941_v17 = vsel %vm2190_vm8, 4294967295, %v2940_v17  ;;  %vm2201_vm4 = vmand %vm2096_vm12, %vm2942_vm0  ;;  %vm219_vm8 = vcmp.ge.f32.partialorder %v1836_v41, %v2005_v12  ;;  %vm580_vm12 = vcmp.ge.f32.partialorder %v2015_v48, %v2081_v29  ;;  %vm579_vm0 = vcmp.ge.f32.partialorder %v2027_v34, %v2081_v29 }
 0x132   :  { %vm2209_vm2 = vmand %vm2137_vm15, %vm593_vm3  ;;  %vm2949_vm15 = vcmp.ge.f32.partialorder %v1999_v10, %v2081_v29  ;;  %v2952_v41 = vmov 0 }
 0x133   :  { %v2946_v3 = vsel %vm2209_vm2, 4294967295, %v2945_v3  ;;  %vm2217_vm1 = vmand %vm236_vm10, %vm401_vm13  ;;  %v2240_v62 = vpop.permute.xlu1 %723  ;;  %vm595_vm2 = vcmp.ge.f32.partialorder %v2033_v28, %v2081_v29  ;;  %v3013_v28 = vld [vmem:[#allocation21_spill] sm:$0xff] }
 0x134   :  { %v2948_v51 = vsel %vm2217_vm1, 4294967295, %v2947_v51  ;;  %vm2230_vm3 = vmand %vm2163_vm7, %vm2949_vm15  ;;  %v644_v34 = vpop.permute.xlu0 %643  ;;  %vm387_vm15 = vcmp.ge.f32.partialorder %v1946_v5, %v2010_v26 }
 0x135   :  { %vm610_vm13 = vmand %vm2119_vm6, %vm578_vm11  ;;  %vm790_vm6 = vcmp.ge.f32.partialorder %v2035_v61, %v2172_v52  ;;  %vm774_vm11 = vcmp.ge.f32.partialorder %v644_v34, %v2172_v52 }
 0x136   :  { %vm2236_vm10 = vmand %vm219_vm8, %vm384_vm5  ;;  %vm2956_vm5 = vnez %v2928_v4 }
 0x137   :  { %v2953_v41 = vsel %vm2236_vm10, 4294967295, %v2952_v41  ;;  %vm807_vm1 = vmand %vm610_vm13, %vm775_vm14  ;;  %vm2959_vm13 = vnez %v2939_v55  ;;  %v728_v10 = vpop.permute.xlu1 %727 }
 0x138   :  { %vm2246_vm7 = vmand %vm2146_vm9, %vm579_vm0  ;;  %vm776_vm9 = vcmp.ge.f32.partialorder %v2040_v47, %v2172_v52  ;;  %v1406_v27 = vsel %vm807_vm1, 1.0, %v1567_v25  ;;  %v712_v48 = vpop.permute.xlu0 %711 }
 0x139   :  { %vm2255_vm8 = vmand %vm2956_vm5, %vm580_vm12  ;;  %vm2962_vm5 = vnez %v2946_v3 }
 0x13a   :  { %vm806_vm0 = vmand %vm2201_vm4, %vm774_vm11  ;;  %vm598_vm4 = vcmp.ge.f32.partialorder %v2043_v35, %v2081_v29  ;;  %v2969_v35 = vmov 0 }
 0x13b   :  { %vm2269_vm10 = vmand %vm2959_vm13, %vm595_vm2  ;;  %v1405_v11 = vsel %vm806_vm0, 1.0, %v1567_v25  ;;  %vm222_vm2 = vcmp.ge.f32.partialorder %v1839_v42, %v2005_v12  ;;  %vm791_vm0 = vcmp.ge.f32.partialorder %v712_v48, %v2172_v52  ;;  %vm2967_vm13 = vcmp.ge.f32.partialorder %v2022_v63, %v2081_v29  ;;  %v2328_v63 = vpop.permute.xlu1 %671  ;;  %v3011_v48 = vld [vmem:[#allocation3_spill] sm:$0xff]  ;;  %v3016_v42 = vld [vmem:[#allocation5_spill] sm:$0xff] }
 0x13c   :  { %vm2277_vm14 = vmand %vm2962_vm5, %vm790_vm6  ;;  %v902_v0 = vpack.c.bf16 %v1406_v27, %v1405_v11  ;;  %vm2968_vm5 = vnez %v2941_v17  ;;  %vm400_vm6 = vcmp.ge.f32.partialorder %v2051_v45, %v2010_v26  ;;  %v3009_v27 = vld [vmem:[#allocation2_spill] sm:$0xff] }
 0x13d   :  { %vm2292_vm1 = vmand %vm2246_vm7, %vm776_vm9  ;;  %vm385_vm7 = vcmp.ge.f32.partialorder %v1939_v21, %v2010_v26  ;;  %v1421_v5 = vsel %vm2277_vm14, 1.0, %v1567_v25  ;;  %vm2981_vm14 = vcmp.ge.f32.partialorder %v2045_v24, %v2172_v52 }
 0x13e   :  { %vm2304_vm11 = vmand %vm2968_vm5, %vm2967_vm13  ;;  %vm2973_vm13 = vcmask 64512   ;;  %vm2974_vm5 = vnez %v2948_v51  ;;  %v1407_v45 = vsel %vm2292_vm1, 1.0, %v1567_v25 }
 0x13f   :  { %v2970_v35 = vsel %vm2304_vm11, 4294967295, %v2969_v35  ;;  %vm2313_vm9 = vmand %vm222_vm2, %vm387_vm15  ;;  %1505 = vmatprep.mubr.msk.bf16.mxu0 %vm2973_vm13, %v902_v0  ;;  %vm220_vm15 = vcmp.ge.f32.partialorder %v1833_v40, %v2005_v12  ;;  %vm2978_vm2 = vnez %v2953_v41  ;;  %vm795_vm13 = vcmp.ge.f32.partialorder %v728_v10, %v2172_v52  ;;  %v656_v40 = vpop.permute.xlu0 %655  ;;  %v736_v24 = vpop.permute.xlu1 %735  ;;  %v3008_v10 = vld [vmem:[#allocation15_spill] sm:$0xff]  ;;  %v3012_v0 = vld [vmem:[#allocation18_spill] sm:$0xff] }
 0x140   :  { %vm823_vm12 = vmand %vm2230_vm3, %vm791_vm0  ;;  %vm235_vm3 = vcmp.ge.f32.partialorder %v1885_v57, %v2005_v12  ;;  %vm2991_vm1 = vnez %v2970_v35 }
 0x141   :  { %vm2324_vm11 = vmand %vm2974_vm5, %vm598_vm4  ;;  %v1422_v15 = vsel %vm823_vm12, 1.0, %v1567_v25  ;;  %vm2977_vm4 = vcmp.ge.f32.partialorder %v2038_v46, %v2081_v29  ;;  %v3028_v46 = vld [vmem:[#allocation22_spill] sm:$0xff] }
 0x142   :  { %vm2343_vm0 = vmand %vm2978_vm2, %vm2977_vm4  ;;  %v910_v57 = vpack.c.bf16 %v1422_v15, %v1421_v5  ;;  %vm777_vm2 = vcmp.ge.f32.partialorder %v656_v40, %v2172_v52  ;;  %v3020_v5 = vld [vmem:[#allocation9_spill] sm:$0xff]  ;;  %v3025_v40 = vmov 0 }
 0x143   :  { %v2980_v49 = vsel %vm2343_vm0, 4294967295, %v2979_v49  ;;  %vm2352_vm12 = vmand %vm2269_vm10, %vm2981_vm14  ;;  %vm597_vm10 = vcmp.ge.f32.partialorder %v2074_v14, %v2081_v29  ;;  %vm584_vm0 = vcmp.ge.f32.partialorder %v2048_v60, %v2081_v29  ;;  %v720_v33 = vpop.permute.xlu0 %719 }
 0x144   :  { %vm2360_vm5 = vmand %vm220_vm15, %vm385_vm7  ;;  %vm2986_vm15 = vcmask 64512  }
 0x145   :  { %vm432_vm4 = vmand %vm235_vm3, %vm400_vm6  ;;  %1521 = vmatprep.mubr.msk.bf16.mxu1 %vm2986_vm15, %v910_v57  ;;  %vm221_vm3 = vcmp.ge.f32.partialorder %v1842_v43, %v2005_v12  ;;  %vm778_vm15 = vcmp.ge.f32.partialorder %v2184_v1, %v2172_v52  ;;  %v3027_v57 = vld [vmem:[#allocation8_spill] sm:$0xff] }
 0x146   :  { %vm809_vm7 = vmand %vm2255_vm8, %vm777_vm2  ;;  %vm2990_vm2 = vcmp.ge.f32.partialorder %v2240_v62, %v2172_v52  ;;  %vm237_vm8 = vcmp.ge.f32.partialorder %v1891_v59, %v2005_v12  ;;  %v2996_v59 = vmov 0 }
 0x147   :  { %vm827_vm6 = vmand %vm2324_vm11, %vm795_vm13  ;;  %v1408_v21 = vsel %vm809_vm7, 1.0, %v1567_v25  ;;  %vm2987_vm11 = vcmp.ge.f32.partialorder %v1943_v22, %v2010_v26  ;;  %v1423_v22 = vsel %vm2352_vm12, 1.0, %v1567_v25  ;;  %vm2998_vm12 = vcmp.ge.f32.partialorder %v2061_v23, %v2010_v26  ;;  %v664_v53 = vpop.permute.xlu0 %663 }
 0x148   :  { %vm629_vm14 = vmand %vm432_vm4, %vm597_vm10  ;;  %v903_v14 = vpack.c.bf16 %v1408_v21, %v1407_v45  ;;  %vm793_vm4 = vcmp.ge.f32.partialorder %v720_v33, %v2172_v52  ;;  %vm238_vm10 = vcmp.ge.f32.partialorder %v1889_v58, %v2005_v12  ;;  %v1426_v43 = vsel %vm827_vm6, 1.0, %v1567_v25  ;;  %v3031_v21 = vld [vmem:[#allocation10_spill] sm:$0xff] }
 0x149   :  { %vm2394_vm13 = vmand %vm221_vm3, %vm2987_vm11  ;;  %vm2992_vm11 = vcmask 64512   ;;  %vm582_vm6 = vcmp.ge.f32.partialorder %v2067_v13, %v2081_v29  ;;  %v2442_v13 = vpop.permute.xlu1 %349  ;;  %v3029_v45 = vmov 0 }
 0x14a   :  { %vm826_vm7 = vmand %vm629_vm14, %vm2990_vm2  ;;  %1506 = vmatmul.mubr.msk.bf16.vlgmr.msra.gmra.mrb[0].mxu0 %vm2992_vm11, %v903_v14 }
 0x14b   :  { %vm825_vm3 = vmand %vm2991_vm1, %vm793_vm4  ;;  %vm2995_vm1 = vcmp.ge.f32.partialorder %v2056_v44, %v2010_v26  ;;  %v1425_v7 = vsel %vm826_vm7, 1.0, %v1567_v25  ;;  %vm781_vm7 = vcmp.ge.f32.partialorder %v2328_v63, %v2172_v52  ;;  %v668_v1 = vpop.permute.xlu0 %667  ;;  %v3019_v63 = vld [vmem:[#allocation4_spill] sm:$0xff] }
 0x14c   :  { %vm2420_vm14 = vmand %vm2313_vm9, %vm584_vm0  ;;  %v1424_v4 = vsel %vm825_vm3, 1.0, %v1567_v25  ;;  %vm600_vm9 = vcmp.ge.f32.partialorder %v2054_v2, %v2081_v29  ;;  %vm3001_vm0 = vnez %v2980_v49  ;;  %v912_v44 = vpack.c.bf16 %v1426_v43, %v1425_v7 }
 0x14d   :  { %vm2430_vm2 = vmand %vm237_vm8, %vm2995_vm1  ;;  %v911_v36 = vpack.c.bf16 %v1424_v4, %v1423_v22  ;;  %vm583_vm1 = vcmp.ge.f32.partialorder %v2090_v31, %v2081_v29  ;;  %v2464_v55 = vpop.permute.xlu1 %353  ;;  %v3039_v4 = vld [vmem:[#allocation11_spill] sm:$0xff] }
 0x14e   :  { %v2997_v59 = vsel %vm2430_vm2, 4294967295, %v2996_v59  ;;  %vm2437_vm4 = vmand %vm238_vm10, %vm2998_vm12  ;;  %vm779_vm10 = vcmp.ge.f32.partialorder %v664_v53, %v2172_v52 }
 0x14f   :  { %vm810_vm8 = vmand %vm3001_vm0, %vm778_vm15  ;;  %1522 = vmatmul.mubr.msk.bf16.vlgmr.msra.gmra.mrb[0].mxu1 %vm2992_vm11, %v911_v36  ;;  %vm780_vm0 = vcmp.ge.f32.partialorder %v668_v1, %v2172_v52  ;;  %v732_v3 = vpop.permute.xlu0 %731 }
 0x150   :  { %vm614_vm3 = vmand %vm2360_vm5, %vm582_vm6  ;;  %v1409_v23 = vsel %vm810_vm8, 1.0, %v1567_v25  ;;  %vm797_vm6 = vcmp.ge.f32.partialorder %v736_v24, %v2172_v52  ;;  %vm599_vm8 = vcmp.ge.f32.partialorder %v2123_v39, %v2081_v29 }
 0x151   :  { %vm811_vm12 = vmand %vm614_vm3, %vm779_vm10  ;;  %v479_v56 = vpop.permute.xlu1 %478 }
 0x152   :  { %vm3002_vm2 = vmmov %vm2992_vm11  ;;  %v1410_v2 = vsel %vm811_vm12, 1.0, %v1567_v25  ;;  %vm389_vm12 = vcmp.ge.f32.partialorder %v3007_v19, %v2010_v26 }
 0x153   :  { %1525 = vmatprep.mubr.msk.bf16.mxu1 %vm3002_vm2, %v912_v44  ;;  %vm632_vm15 = vmand %vm2437_vm4, %vm600_vm9  ;;  %v904_v17 = vpack.c.bf16 %v1410_v2, %v1409_v23  ;;  %v676_v61 = vpop.permute.xlu0 %675 }
 0x154   :  { %vm813_vm5 = vmand %vm2420_vm14, %vm781_vm7  ;;  %vm3004_vm14 = vnez %v2997_v59  ;;  %vm796_vm7 = vcmp.ge.f32.partialorder %v732_v3, %v2172_v52 }
 0x155   :  { %vm615_vm2 = vmand %vm2394_vm13, %vm583_vm1  ;;  %v1412_v31 = vsel %vm813_vm5, 1.0, %v1567_v25  ;;  %v543_v34 = vpop.permute.xlu1 %542  ;;  %vm224_vm5 = vcmp.ge.f32.partialorder %v3009_v27, %v2005_v12 }
 0x156   :  { %vm812_vm4 = vmand %vm615_vm2, %vm780_vm0  ;;  %vm223_vm0 = vcmp.ge.f32.partialorder %v3011_v48, %v2005_v12  ;;  %vm391_vm2 = vcmp.ge.f32.partialorder %v3012_v0, %v2010_v26 }
 0x157   :  { %vm3003_vm9 = vmmov %vm2992_vm11  ;;  %v1411_v54 = vsel %vm812_vm4, 1.0, %v1567_v25  ;;  %v744_v18 = vpop.permute.xlu0 %743 }
 0x158   :  { %1509 = vmatprep.mubr.msk.bf16.mxu0 %vm3003_vm9, %v904_v17  ;;  %vm829_vm10 = vmand %vm632_vm15, %vm797_vm6  ;;  %v905_v51 = vpack.c.bf16 %v1412_v31, %v1411_v54  ;;  %vm388_vm15 = vcmp.ge.f32.partialorder %v3008_v10, %v2010_v26  ;;  %vm390_vm6 = vcmp.ge.f32.partialorder %v3010_v9, %v2010_v26  ;;  %v3052_v10 = vld [vmem:[#allocation20_spill] sm:$0xff]  ;;  %v3054_v9 = vld [vmem:[#allocation7_spill] sm:$0xff] }
 0x159   :  { %vm631_vm3 = vmand %vm3004_vm14, %vm599_vm8  ;;  %v1428_v41 = vsel %vm829_vm10, 1.0, %v1567_v25  ;;  %v547_v20 = vpop.permute.xlu1 %546  ;;  %vm404_vm8 = vcmp.ge.f32.partialorder %v3013_v28, %v2010_v26  ;;  %vm586_vm10 = vcmp.ge.f32.partialorder %v2059_v16, %v2081_v29  ;;  %v3023_v16 = vmov 0  ;;  %v3055_v28 = vld [vmem:[#allocation12_spill] sm:$0xff] }
 0x15a   :  { %vm828_vm13 = vmand %vm631_vm3, %vm796_vm7  ;;  %vm226_vm3 = vcmp.ge.f32.partialorder %v3019_v63, %v2005_v12  ;;  %vm239_vm7 = vcmp.ge.f32.partialorder %v3020_v5, %v2005_v12 }
 0x15b   :  { %v1427_v39 = vsel %vm828_vm13, 1.0, %v1567_v25  ;;  %vm3005_vm11 = vmmov %vm3003_vm9  ;;  %v688_v33 = vpop.permute.xlu0 %687 }
 0x15c   :  { %1510 = vmatmul.mubr.msk.bf16.gmra.mrb[4].mxu0 %vm3005_vm11, %v905_v51  ;;  %v913_v62 = vpack.c.bf16 %v1428_v41, %v1427_v39  ;;  %vm3006_vm1 = vmmov %vm3003_vm9  ;;  %vm225_vm9 = vcmp.ge.f32.partialorder %v3016_v42, %v2005_v12  ;;  %vm405_vm11 = vcmp.ge.f32.partialorder %v2442_v13, %v2010_v26  ;;  %v3047_v51 = vld [vmem:[#allocation13_spill] sm:$0xff]  ;;  %v3057_v42 = vld [vmem:[#allocation14_spill] sm:$0xff] }
 0x15d   :  { %v491_v11 = vpop.permute.xlu1 %490  ;;  %vm2498_vm4 = vmand %vm224_vm5, %vm389_vm12  ;;  %vm585_vm12 = vcmp.ge.f32.partialorder %v479_v56, %v2081_v29  ;;  %vm240_vm5 = vcmp.ge.f32.partialorder %v3027_v57, %v2005_v12  ;;  %v3048_v56 = vmov 0  ;;  %v2659_v57 = vld [vmem:[%s2888_s3] ss:$0 sm:$0xff] }
 0x15e   :  { %1526 = vmatmul.mubr.msk.bf16.gmra.mrb[4].mxu1 %vm3006_vm1, %v913_v62  ;;  %vm2506_vm14 = vmand %vm223_vm0, %vm388_vm15 }
 0x15f   :  { %vm2514_vm13 = vmand %vm225_vm9, %vm390_vm6  ;;  %vm407_vm6 = vcmp.ge.f32.partialorder %v3028_v46, %v2010_v26  ;;  %v752_v36 = vpop.permute.xlu0 %751 }
 0x160   :  { %vm2520_vm1 = vmand %vm239_vm7, %vm404_vm8  ;;  %vm782_vm8 = vcmp.ge.f32.partialorder %v676_v61, %v2172_v52  ;;  %vm242_vm7 = vcmp.ge.f32.partialorder %v3031_v21, %v2005_v12 }
 0x161   :  { %v555_v49 = vpop.permute.xlu1 %554  ;;  %v3024_v16 = vsel %vm2520_vm1, 4294967295, %v3023_v16  ;;  %vm2525_vm15 = vmand %vm226_vm3, %vm391_vm2  ;;  %vm587_vm2 = vcmp.ge.f32.partialorder %v2064_v32, %v2081_v29  ;;  %vm602_vm3 = vcmp.ge.f32.partialorder %v547_v20, %v2081_v29  ;;  %v3034_v32 = vmov 0  ;;  %v3051_v20 = vld [vmem:[#allocation6_spill] sm:$0xff] }
 0x162   :  { %v3026_v40 = vsel %vm2525_vm15, 4294967295, %v3025_v40  ;;  %vm2535_vm0 = vmand %vm2498_vm4, %vm586_vm10  ;;  %vm601_vm10 = vcmp.ge.f32.partialorder %v543_v34, %v2081_v29  ;;  %v3050_v34 = vld [vmem:[#allocation19_spill] sm:$0xff] }
 0x163   :  { %v3030_v45 = vsel %vm2535_vm0, 4294967295, %v3029_v45  ;;  %vm437_vm9 = vmand %vm240_vm5, %vm405_vm11  ;;  %vm799_vm11 = vcmp.ge.f32.partialorder %v744_v18, %v2172_v52 }
 0x164   :  { %vm617_vm15 = vmand %vm2506_vm14, %vm585_vm12  ;;  %vm588_vm14 = vcmp.ge.f32.partialorder %v491_v11, %v2081_v29 }
 0x165   :  { %vm2547_vm1 = vmand %vm242_vm7, %vm407_vm6  ;;  %v680_v14 = vpop.permute.xlu1 %679  ;;  %vm3036_vm6 = vnez %v3030_v45 }
 0x166   :  { %vm814_vm4 = vmand %vm617_vm15, %vm782_vm8  ;;  %vm783_vm12 = vcmp.ge.f32.partialorder %v680_v14, %v2172_v52  ;;  %vm3037_vm8 = vnez %v3024_v16 }
 0x167   :  { %vm2554_vm0 = vmand %vm2514_vm13, %vm587_vm2  ;;  %v1413_v50 = vsel %vm814_vm4, 1.0, %v1567_v25  ;;  %vm406_vm13 = vcmp.ge.f32.partialorder %v2464_v55, %v2010_v26  ;;  %vm241_vm4 = vcmp.ge.f32.partialorder %v3039_v4, %v2005_v12 }
 0x168   :  { %v3035_v32 = vsel %vm2554_vm0, 4294967295, %v3034_v32  ;;  %vm634_vm5 = vmand %vm437_vm9, %vm602_vm3  ;;  %vm785_vm9 = vcmp.ge.f32.partialorder %v688_v33, %v2172_v52  ;;  %vm3038_vm3 = vnez %v3026_v40 }
 0x169   :  { %vm815_vm15 = vmand %vm3036_vm6, %vm783_vm12  ;;  %v740_v58 = vpop.permute.xlu1 %739 }
 0x16a   :  { %vm633_vm7 = vmand %vm3037_vm8, %vm601_vm10  ;;  %v1414_v43 = vsel %vm815_vm15, 1.0, %v1567_v25  ;;  %vm798_vm12 = vcmp.ge.f32.partialorder %v740_v58, %v2172_v52  ;;  %vm604_vm10 = vcmp.ge.f32.partialorder %v555_v49, %v2081_v29  ;;  %vm3040_vm15 = vcmask 64512  }
 0x16b   :  { %vm831_vm2 = vmand %vm634_vm5, %vm799_vm11  ;;  %v906_v22 = vpack.c.bf16 %v1414_v43, %v1413_v50  ;;  %vm801_vm5 = vcmp.ge.f32.partialorder %v752_v36, %v2172_v52 }
 0x16c   :  { %vm620_vm0 = vmand %vm3038_vm3, %vm588_vm14  ;;  %v1430_v60 = vsel %vm831_vm2, 1.0, %v1567_v25 }
 0x16d   :  { %vm830_vm6 = vmand %vm633_vm7, %vm798_vm12  ;;  %1513 = vmatprep.mubr.msk.bf16.mxu0 %vm3040_vm15, %v906_v22  ;;  %v684_v53 = vpop.permute.xlu1 %683 }
 0x16e   :  { %vm2577_vm8 = vmand %vm241_vm4, %vm406_vm13  ;;  %v1429_v7 = vsel %vm830_vm6, 1.0, %v1567_v25  ;;  %vm784_vm7 = vcmp.ge.f32.partialorder %v684_v53, %v2172_v52  ;;  %vm3043_vm13 = vnez %v3035_v32 }
 0x16f   :  { %vm817_vm11 = vmand %vm620_vm0, %vm785_vm9  ;;  %v914_v13 = vpack.c.bf16 %v1430_v60, %v1429_v7  ;;  %vm603_vm0 = vcmp.ge.f32.partialorder %v2069_v8, %v2081_v29 }
 0x170   :  { %vm636_vm14 = vmand %vm2547_vm1, %vm604_vm10  ;;  %v1416_v44 = vsel %vm817_vm11, 1.0, %v1567_v25  ;;  %vm608_vm11 = vcmp.ge.f32.partialorder %v2186_v6, %v2081_v29  ;;  %v696_v6 = vpop.permute.xlu0 %695 }
 0x171   :  { %vm816_vm3 = vmand %vm3043_vm13, %vm784_vm7  ;;  %v748_v55 = vpop.permute.xlu1 %747  ;;  %vm393_vm7 = vcmp.ge.f32.partialorder %v3050_v34, %v2010_v26 }
 0x172   :  { %vm3044_vm12 = vmmov %vm3040_vm15  ;;  %v1415_v23 = vsel %vm816_vm3, 1.0, %v1567_v25  ;;  %vm800_vm9 = vcmp.ge.f32.partialorder %v748_v55, %v2172_v52  ;;  %vm246_vm15 = vcmp.ge.f32.partialorder %v3047_v51, %v2005_v12  ;;  %vm228_vm3 = vcmp.ge.f32.partialorder %v3051_v20, %v2005_v12 }
 0x173   :  { %1529 = vmatprep.mubr.msk.bf16.mxu1 %vm3044_vm12, %v914_v13  ;;  %vm833_vm2 = vmand %vm636_vm14, %vm801_vm5  ;;  %v907_v2 = vpack.c.bf16 %v1416_v44, %v1415_v23 }
 0x174   :  { %vm635_vm1 = vmand %vm2577_vm8, %vm603_vm0  ;;  %v1432_v1 = vsel %vm833_vm2, 1.0, %v1567_v25  ;;  %vm787_vm2 = vcmp.ge.f32.partialorder %v696_v6, %v2172_v52 }
 0x175   :  { %vm832_vm4 = vmand %vm635_vm1, %vm800_vm9  ;;  %v362_v54 = vpop.permute.xlu1 %361 }
 0x176   :  { %vm3045_vm10 = vmmov %vm3044_vm12  ;;  %v1431_v17 = vsel %vm832_vm4, 1.0, %v1567_v25  ;;  %vm394_vm4 = vcmp.ge.f32.partialorder %v3052_v10, %v2010_v26 }
 0x177   :  { %1514 = vmatmul.mubr.msk.bf16.gmra.mrb[8].mxu0 %vm3045_vm10, %v907_v2  ;;  %v915_v31 = vpack.c.bf16 %v1432_v1, %v1431_v17  ;;  %vm3046_vm6 = vmmov %vm3045_vm10  ;;  %vm3053_vm10 = vnez %v2920_v30  ;;  %v700_v30 = vpop.permute.xlu0 %699 }
 0x178   :  { %vm425_vm12 = vmand %vm228_vm3, %vm393_vm7 }
 0x179   :  { %1530 = vmatmul.mubr.msk.bf16.gmra.mrb[8].mxu1 %vm3046_vm6, %v915_v31  ;;  %v370_v8 = vpop.permute.xlu1 %369 }
 0x17b   :  { %v764_v63 = vpop.permute.xlu0 %763 }
 0x17d   :  { %v374_v3 = vpop.permute.xlu1 %373 }
 0x17e   :  { %vm411_vm8 = vcmp.ge.f32.partialorder %v374_v3, %v2010_v26 }
 0x17f   :  { %vm443_vm5 = vmand %vm246_vm15, %vm411_vm8  ;;  %vm408_vm15 = vcmp.ge.f32.partialorder %v362_v54, %v2010_v26  ;;  %vm229_vm8 = vcmp.ge.f32.partialorder %v3054_v9, %v2005_v12 }
 0x180   :  { %vm2606_vm14 = vmand %vm443_vm5, %vm608_vm11  ;;  %vm243_vm5 = vcmp.ge.f32.partialorder %v3055_v28, %v2005_v12 }
 0x181   :  { %v3049_v56 = vsel %vm2606_vm14, 4294967295, %v3048_v56  ;;  %v499_v41 = vpop.permute.xlu1 %498  ;;  %vm426_vm7 = vmand %vm229_vm8, %vm394_vm4  ;;  %vm245_vm14 = vcmp.ge.f32.partialorder %v3057_v42, %v2005_v12  ;;  %vm3058_vm8 = vnez %v2924_v37 }
 0x182   :  { %vm590_vm13 = vcmp.ge.f32.partialorder %v499_v41, %v2081_v29  ;;  %vm440_vm3 = vmand %vm243_vm5, %vm408_vm15  ;;  %vm788_vm5 = vcmp.ge.f32.partialorder %v700_v30, %v2172_v52 }
 0x183   :  { %vm622_vm0 = vmand %vm425_vm12, %vm590_vm13 }
 0x184   :  { %vm819_vm1 = vmand %vm622_vm0, %vm787_vm2  ;;  %vm3056_vm0 = vcmask 64512  }
 0x185   :  { %v559_v39 = vpop.permute.xlu1 %558  ;;  %v1418_v11 = vsel %vm819_vm1, 1.0, %v1567_v25  ;;  %vm410_vm1 = vcmp.ge.f32.partialorder %v370_v8, %v2010_v26 }
 0x186   :  { %vm605_vm11 = vcmp.ge.f32.partialorder %v559_v39, %v2081_v29 }
 0x187   :  { %vm637_vm2 = vmand %vm440_vm3, %vm605_vm11  ;;  %vm3059_vm3 = vnez %v2935_v38 }
 0x189   :  { %v503_v62 = vpop.permute.xlu1 %502 }
 0x18a   :  { %vm591_vm12 = vcmp.ge.f32.partialorder %v503_v62, %v2081_v29 }
 0x18d   :  { %v567_v19 = vpop.permute.xlu1 %566 }
 0x18e   :  { %vm607_vm4 = vcmp.ge.f32.partialorder %v567_v19, %v2081_v29 }
 0x191   :  { %v692_v61 = vpop.permute.xlu1 %691 }
 0x192   :  { %vm786_vm9 = vcmp.ge.f32.partialorder %v692_v61, %v2172_v52 }
 0x193   :  { %vm818_vm6 = vmand %vm3053_vm10, %vm786_vm9 }
 0x194   :  { %v1417_v27 = vsel %vm818_vm6, 1.0, %v1567_v25  ;;  %vm623_vm10 = vmand %vm426_vm7, %vm591_vm12 }
 0x195   :  { %v908_v48 = vpack.c.bf16 %v1418_v11, %v1417_v27  ;;  %v756_v0 = vpop.permute.xlu1 %755  ;;  %vm820_vm11 = vmand %vm623_vm10, %vm788_vm5 }
 0x196   :  { %vm802_vm13 = vcmp.ge.f32.partialorder %v756_v0, %v2172_v52  ;;  %v1419_v12 = vsel %vm820_vm11, 1.0, %v1567_v25 }
 0x197   :  { %1517 = vmatprep.mubr.msk.bf16.mxu0 %vm3056_vm0, %v908_v48  ;;  %vm834_vm9 = vmand %vm637_vm2, %vm802_vm13  ;;  %vm3060_vm2 = vcmask 64512  }
 0x198   :  { %vm442_vm0 = vmand %vm245_vm14, %vm410_vm1  ;;  %v1433_v47 = vsel %vm834_vm9, 1.0, %v1567_v25  ;;  %vm3061_vm9 = vnez %v3049_v56 }
 0x199   :  { %v760_v35 = vpop.permute.xlu1 %759  ;;  %vm639_vm7 = vmand %vm442_vm0, %vm607_vm4 }
 0x19a   :  { %vm803_vm6 = vcmp.ge.f32.partialorder %v760_v35, %v2172_v52  ;;  %vm3062_vm4 = vmmov %vm3060_vm2 }
 0x19b   :  { %vm835_vm15 = vmand %vm3058_vm8, %vm803_vm6  ;;  %vm804_vm6 = vcmp.ge.f32.partialorder %v764_v63, %v2172_v52 }
 0x19c   :  { %v1434_v26 = vsel %vm835_vm15, 1.0, %v1567_v25  ;;  %vm836_vm14 = vmand %vm639_vm7, %vm804_vm6 }
 0x19d   :  { %v916_v5 = vpack.c.bf16 %v1434_v26, %v1433_v47  ;;  %v704_v15 = vpop.permute.xlu1 %703  ;;  %v1435_v38 = vsel %vm836_vm14, 1.0, %v1567_v25  ;;  %vm3063_vm8 = vmmov %vm3060_vm2 }
 0x19e   :  { %vm789_vm13 = vcmp.ge.f32.partialorder %v704_v15, %v2172_v52  ;;  %vm3064_vm7 = vmmov %vm3060_vm2 }
 0x19f   :  { %vm821_vm12 = vmand %vm3059_vm3, %vm789_vm13  ;;  %1533 = vmatprep.mubr.msk.bf16.mxu1 %vm3060_vm2, %v916_v5 }
 0x1a0   :  { %v1420_v29 = vsel %vm821_vm12, 1.0, %v1567_v25  ;;  %vm3065_vm6 = vmmov %vm3060_vm2 }
 0x1a1   :  { %v909_v37 = vpack.c.bf16 %v1420_v29, %v1419_v12  ;;  %v768_v49 = vpop.permute.xlu1 %767 }
 0x1a2   :  { %vm805_vm1 = vcmp.ge.f32.partialorder %v768_v49, %v2172_v52 }
 0x1a3   :  { %vm837_vm10 = vmand %vm3061_vm9, %vm805_vm1  ;;  %1518 = vmatmul.mubr.msk.bf16.gmra.mrb[12].mxu0 %vm3062_vm4, %v909_v37 }
 0x1a4   :  { %v1436_v16 = vsel %vm837_vm10, 1.0, %v1567_v25  ;;  %vm3066_vm1 = vmmov %vm3060_vm2 }
 0x1a5   :  { %v917_v18 = vpack.c.bf16 %v1436_v16, %v1435_v38  ;;  %vm3067_vm9 = vmmov %vm3066_vm1 }
 0x1a7   :  { %1534 = vmatmul.mubr.msk.bf16.gmra.mrb[12].mxu1 %vm3063_vm8, %v917_v18  ;;  %vm3068_vm8 = vmmov %vm3066_vm1 }
 0x21d   :  { %v1507_v40 = vpop.f32.mrb[0].mxu0 }
 0x21e   :  { %vm1135_vm15 = vcmp.ge.f32.partialorder %v1507_v40, 1.0  ;;  %v1006_v52 = vpop.f32.mrb[1].mxu0 }
 0x21f   :  { %v1455_v46 = vsel %vm1135_vm15, 1.0, %v1567_v25  ;;  %vm1133_vm5 = vcmp.ge.f32.partialorder %v1006_v52, 1.0  ;;  %v1508_v45 = vpop.f32.mrb[2].mxu0 }
 0x220   :  { %v1238_v21 = vmul.f32 %v2659_v57, %v1455_v46  ;;  %v1453_v24 = vsel %vm1133_vm5, 1.0, %v1567_v25  ;;  %vm1136_vm0 = vcmp.ge.f32.partialorder %v1508_v45, 1.0  ;;  %v1009_v14 = vpop.f32.mrb[3].mxu0  ;;  %vm3069_vm5 = vmmov %vm3066_vm1 }
 0x221   :  { %v1236_v33 = vmul.f32 %v2659_v57, %v1453_v24  ;;  %v1456_v50 = vsel %vm1136_vm0, 1.0, %v1567_v25  ;;  %vm1134_vm13 = vcmp.ge.f32.partialorder %v1009_v14, 1.0 }
 0x222   :  { %v1523_v32 = vpop.f32.mrb[0].mxu1  ;;  %v1274_v22 = vsel %vm3064_vm7, %v1238_v21, 0.0  ;;  %v1239_v36 = vmul.f32 %v2659_v57, %v1456_v50  ;;  %v1454_v13 = vsel %vm1134_vm13, 1.0, %v1567_v25  ;;  %vm3070_vm7 = vmmov %vm3066_vm1 }
 0x223   :  { %vm1151_vm11 = vcmp.ge.f32.partialorder %v1523_v32, 1.0  ;;  %v1070_v43 = vpop.f32.mrb[1].mxu1  ;;  %1275 = vadd.xlane.f32.xlu0 %v1274_v22  ;;  %v1268_v44 = vsel %vm3060_vm2, %v1236_v33, 0.0  ;;  %v1237_v55 = vmul.f32 %v2659_v57, %v1454_v13  ;;  %vm3071_vm13 = vmmov %vm3066_vm1 }
 0x224   :  { %v1471_v58 = vsel %vm1151_vm11, 1.0, %v1567_v25  ;;  %vm1149_vm3 = vcmp.ge.f32.partialorder %v1070_v43, 1.0  ;;  %v1524_v4 = vpop.f32.mrb[2].mxu1  ;;  %v1277_v31 = vsel %vm3066_vm1, %v1239_v36, 0.0  ;;  %vm3072_vm2 = vmmov %vm3066_vm1 }
 0x225   :  { %v1254_v59 = vmul.f32 %v2659_v57, %v1471_v58  ;;  %v1469_v60 = vsel %vm1149_vm3, 1.0, %v1567_v25  ;;  %vm1152_vm12 = vcmp.ge.f32.partialorder %v1524_v4, 1.0  ;;  %v1073_v7 = vpop.f32.mrb[3].mxu1  ;;  %v1271_v62 = vsel %vm3068_vm8, %v1237_v55, 0.0  ;;  %vm3077_vm8 = vmmov %vm3066_vm1 }
 0x226   :  { %v1252_v53 = vmul.f32 %v2659_v57, %v1469_v60  ;;  %v1472_v2 = vsel %vm1152_vm12, 1.0, %v1567_v25  ;;  %vm1150_vm14 = vcmp.ge.f32.partialorder %v1073_v7, 1.0 }
 0x227   :  { %v1322_v23 = vsel %vm3065_vm6, %v1254_v59, 0.0  ;;  %1269 = vadd.xlane.f32.xlu0 %v1268_v44  ;;  %v1255_v1 = vmul.f32 %v2659_v57, %v1472_v2  ;;  %v1470_v8 = vsel %vm1150_vm14, 1.0, %v1567_v25  ;;  %vm3073_vm6 = vmmov %vm3066_vm1 }
 0x228   :  { %1323 = vadd.xlane.f32.xlu1 %v1322_v23  ;;  %v1316_v54 = vsel %vm3067_vm9, %v1252_v53, 0.0  ;;  %v1253_v34 = vmul.f32 %v2659_v57, %v1470_v8  ;;  %vm3074_vm9 = vmmov %vm3066_vm1 }
 0x229   :  { %v1325_v6 = vsel %vm3069_vm5, %v1255_v1, 0.0 }
 0x22a   :  { %v1319_v0 = vsel %vm3070_vm7, %v1253_v34, 0.0 }
 0x22b   :  { %1278 = vadd.xlane.f32.xlu0 %v1277_v31 }
 0x22c   :  { %1317 = vadd.xlane.f32.xlu1 %v1316_v54 }
 0x22f   :  { %v1511_v17 = vpop.f32.mrb[4].mxu0  ;;  %1326 = vadd.xlane.f32.xlu0 %v1325_v6 }
 0x230   :  { %vm1139_vm10 = vcmp.ge.f32.partialorder %v1511_v17, 1.0  ;;  %v1022_v3 = vpop.f32.mrb[5].mxu0  ;;  %1272 = vadd.xlane.f32.xlu1 %v1271_v62 }
 0x231   :  { %v1459_v51 = vsel %vm1139_vm10, 1.0, %v1567_v25  ;;  %v1512_v56 = vpop.f32.mrb[6].mxu0  ;;  %v1527_v39 = vpop.f32.mrb[4].mxu1  ;;  %vm1137_vm0 = vcmp.ge.f32.partialorder %v1022_v3, 1.0  ;;  %vm3075_vm10 = vmmov %vm3066_vm1 }
 0x232   :  { %vm1140_vm4 = vcmp.ge.f32.partialorder %v1512_v56, 1.0  ;;  %v1025_v41 = vpop.f32.mrb[7].mxu0  ;;  %v1242_v20 = vmul.f32 %v2659_v57, %v1459_v51  ;;  %vm1155_vm15 = vcmp.ge.f32.partialorder %v1527_v39, 1.0  ;;  %v1086_v19 = vpop.f32.mrb[5].mxu1  ;;  %v1457_v30 = vsel %vm1137_vm0, 1.0, %v1567_v25 }
 0x233   :  { %v1460_v61 = vsel %vm1140_vm4, 1.0, %v1567_v25  ;;  %v1475_v10 = vsel %vm1155_vm15, 1.0, %v1567_v25  ;;  %v1528_v11 = vpop.f32.mrb[6].mxu1  ;;  %1320 = vadd.xlane.f32.xlu0 %v1319_v0  ;;  %vm1138_vm3 = vcmp.ge.f32.partialorder %v1025_v41, 1.0  ;;  %vm1153_vm12 = vcmp.ge.f32.partialorder %v1086_v19, 1.0  ;;  %vm3076_vm4 = vmmov %vm3066_vm1 }
 0x234   :  { %vm1156_vm11 = vcmp.ge.f32.partialorder %v1528_v11, 1.0  ;;  %v1089_v27 = vpop.f32.mrb[7].mxu1  ;;  %v1243_v9 = vmul.f32 %v2659_v57, %v1460_v61  ;;  %v1258_v48 = vmul.f32 %v2659_v57, %v1475_v10  ;;  %v1286_v28 = vsel %vm3071_vm13, %v1242_v20, 0.0  ;;  %vm3078_vm13 = vmmov %vm3066_vm1 }
 0x235   :  { %v1476_v35 = vsel %vm1156_vm11, 1.0, %v1567_v25  ;;  %1287 = vadd.xlane.f32.xlu1 %v1286_v28  ;;  %v1240_v42 = vmul.f32 %v2659_v57, %v1457_v30  ;;  %v1458_v5 = vsel %vm1138_vm3, 1.0, %v1567_v25  ;;  %v1473_v15 = vsel %vm1153_vm12, 1.0, %v1567_v25 }
 0x236   :  { %v1259_v47 = vmul.f32 %v2659_v57, %v1476_v35  ;;  %v1289_v26 = vsel %vm3072_vm2, %v1243_v9, 0.0  ;;  %v1334_v63 = vsel %vm3073_vm6, %v1258_v48, 0.0  ;;  %vm1154_vm14 = vcmp.ge.f32.partialorder %v1089_v27, 1.0  ;;  %vm3079_vm2 = vmmov %vm3066_vm1 }
 0x237   :  { %1290 = vadd.xlane.f32.xlu0 %v1289_v26  ;;  %v1241_v12 = vmul.f32 %v2659_v57, %v1458_v5  ;;  %v1256_v29 = vmul.f32 %v2659_v57, %v1473_v15  ;;  %v1280_v37 = vsel %vm3066_vm1, %v1240_v42, 0.0  ;;  %v1474_v38 = vsel %vm1154_vm14, 1.0, %v1567_v25  ;;  %vm3080_vm14 = vmmov %vm3066_vm1 }
 0x238   :  { %v1337_v49 = vsel %vm3074_vm9, %v1259_v47, 0.0  ;;  %v1257_v16 = vmul.f32 %v2659_v57, %v1474_v38  ;;  %vm3081_vm9 = vmmov %vm3066_vm1 }
 0x239   :  { %1335 = vadd.xlane.f32.xlu1 %v1334_v63  ;;  %v1328_v18 = vsel %vm3075_vm10, %v1256_v29, 0.0  ;;  %v1283_v40 = vsel %vm3076_vm4, %v1241_v12, 0.0  ;;  %vm3082_vm10 = vmmov %vm3066_vm1 }
 0x23a   :  { %v1331_v52 = vsel %vm3077_vm8, %v1257_v16, 0.0  ;;  %vm3083_vm4 = vmmov %vm3066_vm1 }
 0x23b   :  { %1338 = vadd.xlane.f32.xlu0 %v1337_v49  ;;  %vm3084_vm8 = vmmov %vm3066_vm1 }
 0x23d   :  { %1281 = vadd.xlane.f32.xlu1 %v1280_v37 }
 0x23f   :  { %1284 = vadd.xlane.f32.xlu0 %v1283_v40 }
 0x241   :  { %1329 = vadd.xlane.f32.xlu1 %v1328_v18 }
 0x243   :  { %1332 = vadd.xlane.f32.xlu0 %v1331_v52 }
 0x24a   :  { %v1515_v46 = vpop.f32.mrb[8].mxu0 }
 0x24b   :  { %vm1143_vm15 = vcmp.ge.f32.partialorder %v1515_v46, 1.0  ;;  %v1038_v45 = vpop.f32.mrb[9].mxu0 }
 0x24c   :  { %v1463_v21 = vsel %vm1143_vm15, 1.0, %v1567_v25  ;;  %v1516_v24 = vpop.f32.mrb[10].mxu0  ;;  %vm1141_vm5 = vcmp.ge.f32.partialorder %v1038_v45, 1.0  ;;  %v1531_v50 = vpop.f32.mrb[8].mxu1 }
 0x24d   :  { %v1246_v14 = vmul.f32 %v2659_v57, %v1463_v21  ;;  %vm1144_vm0 = vcmp.ge.f32.partialorder %v1516_v24, 1.0  ;;  %v1041_v32 = vpop.f32.mrb[11].mxu0  ;;  %vm1159_vm7 = vcmp.ge.f32.partialorder %v1531_v50, 1.0  ;;  %v1102_v22 = vpop.f32.mrb[9].mxu1  ;;  %v1461_v4 = vsel %vm1141_vm5, 1.0, %v1567_v25 }
 0x24e   :  { %v1464_v33 = vsel %vm1144_vm0, 1.0, %v1567_v25  ;;  %vm1142_vm11 = vcmp.ge.f32.partialorder %v1041_v32, 1.0  ;;  %v1479_v59 = vsel %vm1159_vm7, 1.0, %v1567_v25  ;;  %v1532_v60 = vpop.f32.mrb[10].mxu1  ;;  %vm1157_vm3 = vcmp.ge.f32.partialorder %v1102_v22, 1.0  ;;  %vm3085_vm7 = vmmov %vm3066_vm1 }
 0x24f   :  { %v1247_v43 = vmul.f32 %v2659_v57, %v1464_v33  ;;  %v1298_v58 = vsel %vm3078_vm13, %v1246_v14, 0.0  ;;  %v1262_v7 = vmul.f32 %v2659_v57, %v1479_v59  ;;  %vm1160_vm12 = vcmp.ge.f32.partialorder %v1532_v60, 1.0  ;;  %v1105_v36 = vpop.f32.mrb[11].mxu1 }
 0x250   :  { %1299 = vadd.xlane.f32.xlu1 %v1298_v58  ;;  %v1462_v53 = vsel %vm1142_vm11, 1.0, %v1567_v25  ;;  %v1480_v44 = vsel %vm1160_vm12, 1.0, %v1567_v25  ;;  %v1244_v23 = vmul.f32 %v2659_v57, %v1461_v4  ;;  %vm1158_vm6 = vcmp.ge.f32.partialorder %v1105_v36, 1.0  ;;  %vm3086_vm12 = vmmov %vm3066_vm1 }
 0x251   :  { %v1301_v13 = vsel %vm3079_vm2, %v1247_v43, 0.0  ;;  %v1263_v2 = vmul.f32 %v2659_v57, %v1480_v44  ;;  %v1346_v55 = vsel %vm3080_vm14, %v1262_v7, 0.0  ;;  %v1477_v1 = vsel %vm1157_vm3, 1.0, %v1567_v25  ;;  %vm3087_vm14 = vmmov %vm3066_vm1 }
 0x252   :  { %1302 = vadd.xlane.f32.xlu0 %v1301_v13  ;;  %v1245_v17 = vmul.f32 %v2659_v57, %v1462_v53  ;;  %v1478_v54 = vsel %vm1158_vm6, 1.0, %v1567_v25  ;;  %v1260_v8 = vmul.f32 %v2659_v57, %v1477_v1  ;;  %v1292_v3 = vsel %vm3081_vm9, %v1244_v23, 0.0  ;;  %vm3088_vm9 = vmmov %vm3066_vm1 }
 0x253   :  { %v1349_v31 = vsel %vm3066_vm1, %v1263_v2, 0.0  ;;  %v1261_v51 = vmul.f32 %v2659_v57, %v1478_v54 }
 0x254   :  { %1347 = vadd.xlane.f32.xlu1 %v1346_v55  ;;  %v1295_v56 = vsel %vm3082_vm10, %v1245_v17, 0.0  ;;  %v1340_v41 = vsel %vm3083_vm4, %v1260_v8, 0.0  ;;  %vm3089_vm10 = vmmov %vm3066_vm1 }
 0x255   :  { %v1343_v39 = vsel %vm3084_vm8, %v1261_v51, 0.0  ;;  %vm3090_vm4 = vmmov %vm3066_vm1 }
 0x256   :  { %1350 = vadd.xlane.f32.xlu0 %v1349_v31  ;;  %vm3091_vm8 = vmmov %vm3066_vm1 }
 0x258   :  { %1293 = vadd.xlane.f32.xlu1 %v1292_v3 }
 0x25a   :  { %1296 = vadd.xlane.f32.xlu0 %v1295_v56 }
 0x25c   :  { %1341 = vadd.xlane.f32.xlu1 %v1340_v41 }
 0x25e   :  { %1344 = vadd.xlane.f32.xlu0 %v1343_v39 }
 0x276   :  { %v1519_v62 = vpop.f32.mrb[12].mxu0 }
 0x277   :  { %vm1147_vm15 = vcmp.ge.f32.partialorder %v1519_v62, 1.0  ;;  %v1054_v34 = vpop.f32.mrb[13].mxu0 }
 0x278   :  { %v1467_v20 = vsel %vm1147_vm15, 1.0, %v1567_v25  ;;  %vm1145_vm5 = vcmp.ge.f32.partialorder %v1054_v34, 1.0  ;;  %v1520_v19 = vpop.f32.mrb[14].mxu0  ;;  %vm1364_vm15 = vcmask 7168  }
 0x279   :  { %v1250_v6 = vmul.f32 %v2659_v57, %v1467_v20  ;;  %v1465_v61 = vsel %vm1145_vm5, 1.0, %v1567_v25  ;;  %vm1148_vm0 = vcmp.ge.f32.partialorder %v1520_v19, 1.0  ;;  %v1057_v10 = vpop.f32.mrb[15].mxu0 }
 0x27a   :  { %v1468_v11 = vsel %vm1148_vm0, 1.0, %v1567_v25  ;;  %vm1146_vm11 = vcmp.ge.f32.partialorder %v1057_v10, 1.0  ;;  %v1535_v27 = vpop.f32.mrb[12].mxu1  ;;  %v1248_v9 = vmul.f32 %v2659_v57, %v1465_v61 }
 0x27b   :  { %v1251_v48 = vmul.f32 %v2659_v57, %v1468_v11  ;;  %v1466_v0 = vsel %vm1146_vm11, 1.0, %v1567_v25  ;;  %v1118_v28 = vpop.f32.mrb[13].mxu1  ;;  %v1310_v30 = vsel %vm3085_vm7, %v1250_v6, 0.0  ;;  %vm1163_vm3 = vcmp.ge.f32.partialorder %v1535_v27, 1.0 }
 0x27c   :  { %vm1161_vm13 = vcmp.ge.f32.partialorder %v1118_v28, 1.0  ;;  %1311 = vadd.xlane.f32.xlu1 %v1310_v30  ;;  %v1536_v35 = vpop.f32.mrb[14].mxu1  ;;  %v1249_v42 = vmul.f32 %v2659_v57, %v1466_v0  ;;  %v1304_v12 = vsel %vm3087_vm14, %v1248_v9, 0.0  ;;  %v1483_v29 = vsel %vm1163_vm3, 1.0, %v1567_v25 }
 0x27d   :  { %v1481_v47 = vsel %vm1161_vm13, 1.0, %v1567_v25  ;;  %v1121_v26 = vpop.f32.mrb[15].mxu1  ;;  %v1313_v63 = vsel %vm3086_vm12, %v1251_v48, 0.0  ;;  %vm1164_vm6 = vcmp.ge.f32.partialorder %v1536_v35, 1.0  ;;  %v1266_v16 = vmul.f32 %v2659_v57, %v1483_v29 }
 0x27e   :  { %vm1162_vm2 = vcmp.ge.f32.partialorder %v1121_v26, 1.0  ;;  %1314 = vadd.xlane.f32.xlu0 %v1313_v63  ;;  %v1264_v5 = vmul.f32 %v2659_v57, %v1481_v47  ;;  %v1307_v49 = vsel %vm3066_vm1, %v1249_v42, 0.0  ;;  %v1484_v38 = vsel %vm1164_vm6, 1.0, %v1567_v25 }
 0x27f   :  { %v1482_v15 = vsel %vm1162_vm2, 1.0, %v1567_v25  ;;  %v1267_v40 = vmul.f32 %v2659_v57, %v1484_v38  ;;  %v1358_v46 = vsel %vm3090_vm4, %v1266_v16, 0.0 }
 0x280   :  { %1305 = vadd.xlane.f32.xlu1 %v1304_v12  ;;  %v1265_v37 = vmul.f32 %v2659_v57, %v1482_v15  ;;  %v1352_v18 = vsel %vm3088_vm9, %v1264_v5, 0.0 }
 0x281   :  { %v1361_v45 = vsel %vm3091_vm8, %v1267_v40, 0.0 }
 0x282   :  { %1308 = vadd.xlane.f32.xlu0 %v1307_v49  ;;  %v1355_v52 = vsel %vm3089_vm10, %v1265_v37, 0.0 }
 0x284   :  { %1353 = vadd.xlane.f32.xlu1 %v1352_v18 }
 0x286   :  { %1356 = vadd.xlane.f32.xlu0 %v1355_v52 }
 0x288   :  { %1359 = vadd.xlane.f32.xlu1 %v1358_v46 }
 0x28a   :  { %1362 = vadd.xlane.f32.xlu0 %v1361_v45 }
 0x2b0   :  { %v1276_v21 = vpop.xlane.xlu0 %1275 }
 0x2b1   :  { %1367 = vst.msk [vmem:[%s2889_s4 + $0x10] sm:$0xff] %vm1364_vm15, %v1276_v21 }
 0x2b4   :  { %v1270_v24 = vpop.xlane.xlu0 %1269 }
 0x2b5   :  { %v1324_v25 = vpop.xlane.xlu1 %1323  ;;  %1365 = vst.msk [vmem:[%s2889_s4] sm:$0xff] %vm1364_vm15, %v1270_v24 }
 0x2b6   :  { %1383 = vst.msk [vmem:[%s2889_s4 + $0x90] sm:$0xff] %vm1364_vm15, %v1324_v25 }
 0x2b8   :  { %v1279_v14 = vpop.xlane.xlu0 %1278 }
 0x2b9   :  { %v1318_v57 = vpop.xlane.xlu1 %1317  ;;  %1368 = vst.msk [vmem:[%s2889_s4 + $0x18] sm:$0xff] %vm1364_vm15, %v1279_v14 }
 0x2ba   :  { %1381 = vst.msk [vmem:[%s2889_s4 + $0x80] sm:$0xff] %vm1364_vm15, %v1318_v57 }
 0x2bc   :  { %v1327_v33 = vpop.xlane.xlu0 %1326 }
 0x2bd   :  { %v1273_v32 = vpop.xlane.xlu1 %1272  ;;  %1384 = vst.msk [vmem:[%s2889_s4 + $0x98] sm:$0xff] %vm1364_vm15, %v1327_v33 }
 0x2be   :  { %1366 = vst.msk [vmem:[%s2889_s4 + $0x8] sm:$0xff] %vm1364_vm15, %v1273_v32 }
 0x2c0   :  { %v1321_v43 = vpop.xlane.xlu0 %1320 }
 0x2c1   :  { %1382 = vst.msk [vmem:[%s2889_s4 + $0x88] sm:$0xff] %vm1364_vm15, %v1321_v43 }
 0x2c2   :  { %v1288_v50 = vpop.xlane.xlu1 %1287 }
 0x2c3   :  { %1371 = vst.msk [vmem:[%s2889_s4 + $0x30] sm:$0xff] %vm1364_vm15, %v1288_v50 }
 0x2c4   :  { %v1291_v58 = vpop.xlane.xlu0 %1290 }
 0x2c5   :  { %1372 = vst.msk [vmem:[%s2889_s4 + $0x38] sm:$0xff] %vm1364_vm15, %v1291_v58 }
 0x2c6   :  { %v1336_v22 = vpop.xlane.xlu1 %1335 }
 0x2c7   :  { %1387 = vst.msk [vmem:[%s2889_s4 + $0xb0] sm:$0xff] %vm1364_vm15, %v1336_v22 }
 0x2c8   :  { %v1339_v59 = vpop.xlane.xlu0 %1338 }
 0x2c9   :  { %1388 = vst.msk [vmem:[%s2889_s4 + $0xb8] sm:$0xff] %vm1364_vm15, %v1339_v59 }
 0x2ca   :  { %v1282_v4 = vpop.xlane.xlu1 %1281 }
 0x2cb   :  { %1369 = vst.msk [vmem:[%s2889_s4 + $0x20] sm:$0xff] %vm1364_vm15, %v1282_v4 }
 0x2cc   :  { %v1285_v7 = vpop.xlane.xlu0 %1284 }
 0x2cd   :  { %1370 = vst.msk [vmem:[%s2889_s4 + $0x28] sm:$0xff] %vm1364_vm15, %v1285_v7 }
 0x2ce   :  { %v1330_v60 = vpop.xlane.xlu1 %1329 }
 0x2cf   :  { %1385 = vst.msk [vmem:[%s2889_s4 + $0xa0] sm:$0xff] %vm1364_vm15, %v1330_v60 }
 0x2d0   :  { %v1333_v36 = vpop.xlane.xlu0 %1332 }
 0x2d1   :  { %1386 = vst.msk [vmem:[%s2889_s4 + $0xa8] sm:$0xff] %vm1364_vm15, %v1333_v36 }
 0x2dd   :  { %v1300_v13 = vpop.xlane.xlu1 %1299 }
 0x2de   :  { %1375 = vst.msk [vmem:[%s2889_s4 + $0x50] sm:$0xff] %vm1364_vm15, %v1300_v13 }
 0x2df   :  { %v1303_v53 = vpop.xlane.xlu0 %1302 }
 0x2e0   :  { %1376 = vst.msk [vmem:[%s2889_s4 + $0x58] sm:$0xff] %vm1364_vm15, %v1303_v53 }
 0x2e1   :  { %v1348_v44 = vpop.xlane.xlu1 %1347 }
 0x2e2   :  { %1391 = vst.msk [vmem:[%s2889_s4 + $0xd0] sm:$0xff] %vm1364_vm15, %v1348_v44 }
 0x2e3   :  { %v1351_v23 = vpop.xlane.xlu0 %1350 }
 0x2e4   :  { %1392 = vst.msk [vmem:[%s2889_s4 + $0xd8] sm:$0xff] %vm1364_vm15, %v1351_v23 }
 0x2e5   :  { %v1294_v2 = vpop.xlane.xlu1 %1293 }
 0x2e6   :  { %1373 = vst.msk [vmem:[%s2889_s4 + $0x40] sm:$0xff] %vm1364_vm15, %v1294_v2 }
 0x2e7   :  { %v1297_v55 = vpop.xlane.xlu0 %1296 }
 0x2e8   :  { %1374 = vst.msk [vmem:[%s2889_s4 + $0x48] sm:$0xff] %vm1364_vm15, %v1297_v55 }
 0x2e9   :  { %v1342_v1 = vpop.xlane.xlu1 %1341 }
 0x2ea   :  { %1389 = vst.msk [vmem:[%s2889_s4 + $0xc0] sm:$0xff] %vm1364_vm15, %v1342_v1 }
 0x2eb   :  { %v1345_v17 = vpop.xlane.xlu0 %1344 }
 0x2ec   :  { %1390 = vst.msk [vmem:[%s2889_s4 + $0xc8] sm:$0xff] %vm1364_vm15, %v1345_v17 }
 0x309   :  { %v1312_v31 = vpop.xlane.xlu1 %1311 }
 0x30a   :  { %1379 = vst.msk [vmem:[%s2889_s4 + $0x70] sm:$0xff] %vm1364_vm15, %v1312_v31 }
 0x30b   :  { %v1315_v54 = vpop.xlane.xlu0 %1314 }
 0x30c   :  { %1380 = vst.msk [vmem:[%s2889_s4 + $0x78] sm:$0xff] %vm1364_vm15, %v1315_v54 }
 0x30d   :  { %v1306_v8 = vpop.xlane.xlu1 %1305 }
 0x30e   :  { %1377 = vst.msk [vmem:[%s2889_s4 + $0x60] sm:$0xff] %vm1364_vm15, %v1306_v8 }
 0x30f   :  { %v1309_v3 = vpop.xlane.xlu0 %1308 }
 0x310   :  { %1378 = vst.msk [vmem:[%s2889_s4 + $0x68] sm:$0xff] %vm1364_vm15, %v1309_v3 }
 0x311   :  { %v1354_v51 = vpop.xlane.xlu1 %1353 }
 0x312   :  { %1393 = vst.msk [vmem:[%s2889_s4 + $0xe0] sm:$0xff] %vm1364_vm15, %v1354_v51 }
 0x313   :  { %v1357_v56 = vpop.xlane.xlu0 %1356 }
 0x314   :  { %1394 = vst.msk [vmem:[%s2889_s4 + $0xe8] sm:$0xff] %vm1364_vm15, %v1357_v56 }
 0x315   :  { %v1360_v41 = vpop.xlane.xlu1 %1359 }
 0x316   :  { %1395 = vst.msk [vmem:[%s2889_s4 + $0xf0] sm:$0xff] %vm1364_vm15, %v1360_v41 }
 0x317   :  { %v1363_v39 = vpop.xlane.xlu0 %1362 }
 0x318   :  { %1396 = vst.msk [vmem:[%s2889_s4 + $0xf8] sm:$0xff] %vm1364_vm15, %v1363_v39 }

</bundles_post_ra>
